<compile_context>
chip_gen: v7x
topology: tpu7x:2x2x1
jax: 0.10.0
libtpu: 0.0.40
codegen_flags: <defaults>
</compile_context>

<pallas_src>
import math

import jax
import jax.numpy as jnp
from jax.experimental import pallas as pl
from jax.experimental.pallas import tpu as pltpu

_VMEM_LIMIT_BYTES = 48 * 1024 * 1024


# ---------------------------------------------------------------------------
# Kernel A: fused Q/K/V projection (bf16 operands, f32 accumulation).
# ---------------------------------------------------------------------------
def qkv_proj_kernel(x_ref, w_ref, b_ref, qkv_ref):
    # x arrives f32; cast to bf16 in-kernel (VPU work hidden under the MXU)
    # instead of a wrapper-side XLA convert that costs an extra HBM pass.
    x = x_ref[...].astype(jnp.bfloat16)                         # (tr, E)
    acc = jnp.dot(x, w_ref[...], preferred_element_type=jnp.float32)
    qkv_ref[...] = (acc + b_ref[0]).astype(qkv_ref.dtype)       # (tr, 3E)


# ---------------------------------------------------------------------------
# Kernel B: flash attention (head = grid axis) + fused output projection.
# ---------------------------------------------------------------------------
def flash_attn_out_kernel(q_ref, k_ref, v_ref, wo_ref, bo_ref, o_ref,
                          m_ref, l_ref, acc_ref, out_acc_ref):
    h = pl.program_id(2)
    ki = pl.program_id(3)
    last_h = pl.num_programs(2) - 1
    last_k = pl.num_programs(3) - 1

    @pl.when((h == 0) & (ki == 0))
    def _init_output_acc():
        out_acc_ref[...] = jnp.zeros_like(out_acc_ref)

    @pl.when(ki == 0)
    def _init_head_state():
        m_ref[...] = jnp.full(m_ref.shape, -jnp.inf, m_ref.dtype)
        l_ref[...] = jnp.zeros_like(l_ref)
        acc_ref[...] = jnp.zeros_like(acc_ref)

    q = q_ref[0]                                                # (tq, D) bf16, pre-scaled
    k = k_ref[0]                                                # (tk, D) bf16

    # Scores: contract over D (q already carries the 1/sqrt(D) scale).
    s = jax.lax.dot_general(q, k, (((1,), (1,)), ((), ())),
                            preferred_element_type=jnp.float32)  # (tq, tk) f32

    # m/l are lane-uniform (tq, 128) buffers -> lane-dense scratch stores.
    m_prev = m_ref[...]                                          # (tq, 128)
    m_new = jnp.maximum(m_prev, jnp.max(s, axis=-1, keepdims=True))
    alpha = jnp.exp(m_prev - m_new)                              # (tq, 128)
    p = jnp.exp(s - m_new[:, 0:1])                               # (tq, tk) f32

    l_ref[...] = alpha * l_ref[...] + jnp.sum(p, axis=-1, keepdims=True)
    acc_ref[...] = alpha[:, 0:1] * acc_ref[...] + jnp.dot(
        p.astype(v_ref.dtype), v_ref[0], preferred_element_type=jnp.float32)
    m_ref[...] = m_new

    # TODO(synk): optional attention_mask (additive -inf) not implemented;
    # matches the attention_mask=None path of the PyTorch module.
    # TODO(synk): nn.Dropout on attn_probs is identity in eval mode; training
    # dropout (pltpu.prng_random_bits) not implemented.

    @pl.when(ki == last_k)
    def _finalize_head():
        # Exact reciprocal (epilogue-only -> negligible cost) for tighter
        # parity with the f32 PyTorch softmax.
        inv_l = pl.reciprocal(l_ref[:, 0:1], approx=False)       # (tq, 1)
        attn_h = (acc_ref[...] * inv_l).astype(wo_ref.dtype)     # (tq, D) bf16
        out_acc_ref[...] += jnp.dot(attn_h, wo_ref[...],
                                    preferred_element_type=jnp.float32)

    @pl.when((h == last_h) & (ki == last_k))
    def _write_output():
        # Kept f32 to match the module's output dtype; switch to bf16 here to
        # halve writeback DMA if downstream tolerates it.
        o_ref[0] = (out_acc_ref[...] + bo_ref[0]).astype(o_ref.dtype)


# ---------------------------------------------------------------------------
# Wrapper
# ---------------------------------------------------------------------------
def multi_head_self_attention(x, params, *, num_heads,
                              row_tile=256, q_tile=256, kv_tile=256):
    """x: (B, S, E) float32.  params: pre-transposed (in, out) f32 weights."""
    B, S, E = x.shape
    assert E % num_heads == 0
    H = num_heads
    D = E // H
    # Head slices are lane-aligned blocks of the (B, S, 3E) QKV tensor.
    # TODO(synk): D < 128 (e.g. head_dim 64) would need (8,128)-padded head
    # blocks or a merged-E layout; not implemented here.
    assert D % 128 == 0, "head_dim must be a multiple of the 128-lane tile"
    inv_scale = 1.0 / math.sqrt(D)

    # Fused QKV weight/bias; 1/sqrt(D) folded into the Q columns (zero cost).
    w_qkv = jnp.concatenate(
        [params["wq"] * inv_scale, params["wk"], params["wv"]],
        axis=1).astype(jnp.bfloat16)                             # (E, 3E)
    b_qkv = jnp.concatenate(
        [params["bq"] * inv_scale, params["bk"], params["bv"]],
        axis=1)                                                  # (1, 3E) f32
    wo = params["wo"].astype(jnp.bfloat16)                       # (E, E)
    bo = params["bo"]                                            # (1, E) f32

    # ---- Kernel A: fused QKV projection over row tiles of the flat input ----
    R = B * S
    tr = min(row_tile, R)
    assert R % tr == 0, "B*S must be a multiple of the row tile"
    x2 = x.reshape(R, E)                                         # stays f32

    qkv_cost = pl.CostEstimate(
        flops=2 * R * E * 3 * E,
        transcendentals=0,
        bytes_accessed=R * E * 4 + E * 3 * E * 2 + 3 * E * 4 + R * 3 * E * 2)

    qkv = pl.pallas_call(
        qkv_proj_kernel,
        out_shape=jax.ShapeDtypeStruct((R, 3 * E), jnp.bfloat16),
        grid_spec=pltpu.PrefetchScalarGridSpec(
            num_scalar_prefetch=0,
            grid=(R // tr,),
            in_specs=[
                pl.BlockSpec((tr, E), lambda i: (i, 0)),
                # Grid-invariant weight/bias (Buffered(1) candidates on
                # VMEM-tight v7x configs).
                pl.BlockSpec((E, 3 * E), lambda i: (0, 0)),
                pl.BlockSpec((1, 3 * E), lambda i: (0, 0)),
            ],
            out_specs=pl.BlockSpec((tr, 3 * E), lambda i: (i, 0)),
        ),
        compiler_params=pltpu.CompilerParams(
            dimension_semantics=("parallel",),
            vmem_limit_bytes=_VMEM_LIMIT_BYTES),
        cost_estimate=qkv_cost,
    )(x2, w_qkv, b_qkv)

    qkv3 = qkv.reshape(B, S, 3 * E)          # metadata-only reshape

    # ---- Kernel B: flash attention + fused output projection ----
    tq = min(q_tile, S)
    tk = min(kv_tile, S)
    assert S % tq == 0 and S % tk == 0, "S must be a multiple of the seq tiles"
    q_tiles, kv_tiles = S // tq, S // tk

    attn_cost = pl.CostEstimate(
        flops=B * H * (4 * S * S * D + 2 * S * D * E),
        transcendentals=B * H * S * S,
        bytes_accessed=(B * q_tiles * H * tq * D * 2             # q tiles
                        + 2 * B * q_tiles * H * S * D * 2        # k, v tiles
                        + B * q_tiles * H * D * E * 2            # wo head slices
                        + B * S * E * 4))                        # output

    # Blocks of size D along the last (3E) axis: q head h -> block h,
    # k head h -> block H + h, v head h -> block 2H + h.
    q_spec = pl.BlockSpec((1, tq, D), lambda b, qi, h, ki: (b, qi, h))
    k_spec = pl.BlockSpec((1, tk, D), lambda b, qi, h, ki: (b, ki, h + H))
    v_spec = pl.BlockSpec((1, tk, D), lambda b, qi, h, ki: (b, ki, h + 2 * H))
    wo_spec = pl.BlockSpec((D, E), lambda b, qi, h, ki: (h, 0))
    bo_spec = pl.BlockSpec((1, E), lambda b, qi, h, ki: (0, 0))
    out_spec = pl.BlockSpec((1, tq, E), lambda b, qi, h, ki: (b, qi, 0))

    out = pl.pallas_call(
        flash_attn_out_kernel,
        out_shape=jax.ShapeDtypeStruct((B, S, E), jnp.float32),
        grid_spec=pltpu.PrefetchScalarGridSpec(
            num_scalar_prefetch=0,
            grid=(B, q_tiles, H, kv_tiles),
            in_specs=[q_spec, k_spec, v_spec, wo_spec, bo_spec],
            out_specs=out_spec,
            scratch_shapes=[
                pltpu.VMEM((tq, 128), jnp.float32),   # running max m (lane-dense)
                pltpu.VMEM((tq, 128), jnp.float32),   # running sum l (lane-dense)
                pltpu.VMEM((tq, D), jnp.float32),     # per-head PV accumulator
                pltpu.VMEM((tq, E), jnp.float32),     # projected-output accumulator
            ],
        ),
        compiler_params=pltpu.CompilerParams(
            dimension_semantics=("parallel", "parallel", "arbitrary", "arbitrary"),
            vmem_limit_bytes=_VMEM_LIMIT_BYTES),
        cost_estimate=attn_cost,
    )(qkv3, qkv3, qkv3, wo, bo)

    return out.astype(x.dtype)


# ---------------------------------------------------------------------------
# Pure-JAX reference (f32, mirrors the PyTorch forward in eval mode, no mask).
# ---------------------------------------------------------------------------
def reference_mhsa(x, params, *, num_heads):
    B, S, E = x.shape
    D = E // num_heads
    scale = math.sqrt(D)

    def proj(w, b):
        return jnp.einsum('bse,ef->bsf', x, w) + b[0]

    q = proj(params["wq"], params["bq"]).reshape(B, S, num_heads, D).transpose(0, 2, 1, 3)
    k = proj(params["wk"], params["bk"]).reshape(B, S, num_heads, D).transpose(0, 2, 1, 3)
    v = proj(params["wv"], params["bv"]).reshape(B, S, num_heads, D).transpose(0, 2, 1, 3)
    scores = jnp.einsum('bhsd,bhtd->bhst', q, k) / scale
    probs = jax.nn.softmax(scores, axis=-1)
    attn = jnp.einsum('bhst,bhtd->bhsd', probs, v)
    attn = attn.transpose(0, 2, 1, 3).reshape(B, S, E)
    return jnp.einsum('bse,ef->bsf', attn, params["wo"]) + params["bo"][0]


def init_params(key, embed):
    """Weights stored pre-transposed as (in, out) f32, biases as (1, out)."""
    keys = jax.random.split(key, 8)
    bound = 1.0 / math.sqrt(embed)

    def lin(kw, kb):
        w = jax.random.uniform(kw, (embed, embed), jnp.float32, -bound, bound)
        b = jax.random.uniform(kb, (1, embed), jnp.float32, -bound, bound)
        return w, b

    wq, bq = lin(keys[0], keys[1])
    wk, bk = lin(keys[2], keys[3])
    wv, bv = lin(keys[4], keys[5])
    wo, bo = lin(keys[6], keys[7])
    return dict(wq=wq, bq=bq, wk=wk, bk=bk, wv=wv, bv=bv, wo=wo, bo=bo)


if __name__ == "__main__":
    # batch, seq, embed, heads (head_dim = 128: lane-aligned head slices; all
    # parallel grid axes end up with >= 2 iterations for v7x megacore, and the
    # multi-kv-tile / multi-q-tile / multi-head paths are all exercised).
    B, S, E, H = 2, 512, 256, 2

    key = jax.random.PRNGKey(0)
    k_x, k_p = jax.random.split(key)
    x = jax.random.normal(k_x, (B, S, E), jnp.float32)
    params = init_params(k_p, E)

    out = multi_head_self_attention(x, params, num_heads=H)
    out = jax.block_until_ready(out)

    ref = reference_mhsa(x, params, num_heads=H)
    assert out.shape == (B, S, E)
    max_err = float(jnp.max(jnp.abs(out - ref)))
    # bf16 matmul operands (f32 accumulation) -> loosened tolerance vs f32 ref.
    assert jnp.allclose(out, ref, atol=2e-2, rtol=2e-2), (
        f"mismatch vs JAX reference (max abs err {max_err})")

    print("KERNEL_OK")
</pallas_src>

<mosaic_0001>
module attributes {stable_mosaic.version = 11 : i64} {
  func.func @qkv_proj_kernel(%arg0: i32, %arg1: memref<256x256xf32, #tpu.memory_space<vmem>>, %arg2: memref<256x768xbf16, #tpu.memory_space<vmem>>, %arg3: memref<1x768xf32, #tpu.memory_space<vmem>>, %arg4: memref<256x768xbf16, #tpu.memory_space<vmem>>) attributes {dimension_semantics = [#tpu.dimension_semantics<parallel>], iteration_bounds = array<i64: 4>, scalar_prefetch = 0 : i64, scratch_operands = 0 : i64, tpu.core_type = #tpu.core_type<tc>, window_params = [{transform_indices = @transform_0, window_bounds = array<i64: 256, 256>}, {pipeline_mode = #tpu.pipeline_mode<synchronous>, transform_indices = @transform_1, window_bounds = array<i64: 256, 768>}, {pipeline_mode = #tpu.pipeline_mode<synchronous>, transform_indices = @transform_2, window_bounds = array<i64: 1, 768>}, {transform_indices = @transform_3, window_bounds = array<i64: 256, 768>}]} {
    %c0 = arith.constant 0 : index
    %c0_0 = arith.constant 0 : index
    %0 = vector.load %arg1[%c0, %c0_0] : memref<256x256xf32, #tpu.memory_space<vmem>>, vector<256x256xf32>
    %1 = arith.truncf %0 : vector<256x256xf32> to vector<256x256xbf16>
    %c0_1 = arith.constant 0 : index
    %c0_2 = arith.constant 0 : index
    %2 = vector.load %arg2[%c0_1, %c0_2] : memref<256x768xbf16, #tpu.memory_space<vmem>>, vector<256x768xbf16>
    %cst = arith.constant dense<0.000000e+00> : vector<256x768xf32>
    %3 = tpu.matmul %1, %2, %cst {dimension_numbers = #tpu.dot_dimension_numbers<[1], [0], [0], [1], [0, 0, 1, 1], [], []>} : vector<256x256xbf16>, vector<256x768xbf16>, vector<256x768xf32> -> vector<256x768xf32>
    %c0_3 = arith.constant 0 : index
    %c0_4 = arith.constant 0 : index
    %4 = vector.load %arg3[%c0_3, %c0_4] : memref<1x768xf32, #tpu.memory_space<vmem>>, vector<1x768xf32>
    %5 = vector.shape_cast %4 : vector<1x768xf32> to vector<768xf32>
    %6 = vector.shape_cast %5 : vector<768xf32> to vector<1x768xf32>
    %7 = vector.broadcast %6 : vector<1x768xf32> to vector<256x768xf32>
    %8 = arith.addf %3, %7 : vector<256x768xf32>
    %9 = arith.truncf %8 : vector<256x768xf32> to vector<256x768xbf16>
    %c0_5 = arith.constant 0 : index
    %c0_6 = arith.constant 0 : index
    %10 = vector.load %arg4[%c0_5, %c0_6] : memref<256x768xbf16, #tpu.memory_space<vmem>>, vector<256x768xbf16>
    tpu.vector_store %arg4[%c0_5, %c0_6], %9 {strides = array<i32>} : memref<256x768xbf16, #tpu.memory_space<vmem>>, vector<256x768xbf16>,
    return
  }
  func.func @transform_0(%arg0: i32) -> (i32, i32) {
    %c0_i32 = arith.constant 0 : i32
    %c0_i32_0 = arith.constant 0 : i32
    return %arg0, %c0_i32 : i32, i32
  }
  func.func @transform_1(%arg0: i32) -> (i32, i32) {
    %c0_i32 = arith.constant 0 : i32
    %c0_i32_0 = arith.constant 0 : i32
    %c0_i32_1 = arith.constant 0 : i32
    return %c0_i32, %c0_i32_0 : i32, i32
  }
  func.func @transform_2(%arg0: i32) -> (i32, i32) {
    %c0_i32 = arith.constant 0 : i32
    %c0_i32_0 = arith.constant 0 : i32
    %c0_i32_1 = arith.constant 0 : i32
    return %c0_i32, %c0_i32_0 : i32, i32
  }
  func.func @transform_3(%arg0: i32) -> (i32, i32) {
    %c0_i32 = arith.constant 0 : i32
    %c0_i32_0 = arith.constant 0 : i32
    return %arg0, %c0_i32 : i32, i32
  }
}

</mosaic_0001>

<bundles_post_ra>
// kernel: tpu_custom_call.1
= control target key start
LH: loop header
LB: loop body
LE: loop exit
PB: predicated region body
PF: predicated region fallthrough
CT: control target
= control target key end

     0   :  { %8 = vsyncpa [#allocation3], 0  ;;  %s3778_s0 = inlined_call_operand.hbm [shape: f32[1024,256], index: 0, kind: input, shape index: {}]   ;;  %s3779_s1 = inlined_call_operand.hbm [shape: bf16[256,768], index: 1, kind: input, shape index: {}]   ;;  %s3780_s2 = inlined_call_operand.hbm [shape: f32[1,768], index: 2, kind: input, shape index: {}]   ;;  %s3781_s3 = inlined_call_operand.hbm [shape: bf16[1024,768], index: 3, kind: output, shape index: {}]  }
   0x1   :  { %10 = vsyncpa [#allocation3 + $0x1], 0 }
   0x2   :  { %11 = vsyncpa [#allocation6], 0 }
   0x3   :  { %12 = vsyncpa [#allocation4], 0 }
   0x4   :  { %14 = vsyncpa [#allocation4 + $0x1], 0  ;;  %s3028_s12 = smov 0   ;;  %s3030_s13 = smov 0  }
   0x5   :  { %s3032_s14 = smov 0   ;;  %s3034_s15 = smov 0  }
   0x6 LB: > { %s3049_s16 = sadd.s32 4294967295, %s2996_s15   ;;  %s2281_s17 = sadd.s32 4294967294, %s2996_s15   ;;  %s2996_s15 = sphi %s3034_s15, %s3800_s15   ;;  %s2992_s14 = sphi %s3032_s14, %s3799_s14   ;;  %s2988_s13 = sphi %s3030_s13, %s3798_s13   ;;  %s2984_s12 = sphi %s3028_s12, %s3797_s12  }
   0x7   : > { %p40_p0 = scmp.ne.s32.totalorder %s2988_s13, %s2984_s12  ;;  %p3782_p1 = scmp.eq.s32.totalorder %s3049_s16, 0 }
   0x8   : > { %p112_p3 = scmp.eq.s32.totalorder %s2281_s17, 3  ;;  %p2282_p5 = scmp.ge.s32.totalorder %s2996_s15, 1 }
   0x9   : > { %p3058_p4 = por %p3782_p1, %p40_p0  ;;  %p119_p7 = scmp.lt.s32.totalorder %s2996_s15, 5 }
   0xa   : > { %p3063_p6 = por %p112_p3, %p40_p0  ;;  %s2998_s21 = smov [#allocation5]  }
   0xb   : > { %s3785_s18 = scalar_select %p3058_p4, 1, 0 }
   0xc   : > { %s3786_s19 = scalar_select %p3063_p6, 1, 0 }
   0xd   : > { %p3068_p8 = pnand %p2282_p5, %p119_p7  ;;  %s131_s22 = sshll.u32 %s2998_s21, 4  ;;  %s132_s22 = int_to_ptr.vmem [resolvable:$true] %s131_s22 }
   0xe   : > { %s2999_s24 = smov [#allocation7]   ;;  %s2840_s28 = scalar_lea.hbm %s3779_s1, 12288 }
   0xf   : > { %s3787_s20 = scalar_select %p3068_p8, 1, 0 }
  0x10   : > { %p2635_p9 = pneg %p3068_p8  ;;  %s145_s25 = sshll.u32 %s2999_s24, 4  ;;  %s3080_s25 = int_to_ptr.vmem [resolvable:$true] %s145_s25 }
  0x11   : > { %p2841_p11 = scmp.ne.s32.totalorder %s3779_s1, %s2840_s28  ;;  %p2847_p3 = scmp.lt.u32.totalorder %s2840_s28, %s3779_s1 }
  0x12   : > { %p3076_p10 = pnand %p2635_p9, %p3782_p1 }
  0x14   : > { %p2842_p12 = pneg %p3076_p10 }
  0x16   : > { %p2843_p13 = pnand %p2842_p12, %p2841_p11 }
  0x18   : > { %p2844_p0 = pneg %p2843_p13 }
  0x1a   : > { %p2849_p5 = pnand %p2847_p3, %p2844_p0 }
  0x1c   : > { %2852 = shalt.err (!%p2849_p5)
}
  0x1d   : > { %s2853_s6 = scalar_lea.vmem %s132_s22, 12288  ;;  %p2861_p2 = scmp.lt.s32.totalorder %s132_s22, %s132_s22 }
  0x1e   : > { %p2854_p7 = scmp.ne.s32.totalorder %s132_s22, %s2853_s6  ;;  %p2862_p6 = scmp.lt.s32.totalorder %s2853_s6, %s2853_s6 }
  0x20   : > { %p2856_p9 = pnand %p2854_p7, %p2842_p12  ;;  %p2863_p4 = por %p2862_p6, %p2861_p2 }
  0x22   : > { %p2857_p1 = pneg %p2856_p9 }
  0x24   : > { %p2864_p8 = pnand %p2863_p4, %p2857_p1 }
  0x26   : > { %2867 = shalt.err (!%p2864_p8)
}
  0x27   : > { %s3000_s7 = smov 384   ;;  %s3001_s8 = smov 24  }
  0x28   : > { %2638 = dma.hbm_to_vmem [thread:$0]  (!%p3076_p10), %s3779_s1, 12288, %s132_s22, [#allocation6], %s3000_s7, %s3000_s7, %s3001_s8  }
  0x29   : > { %s2868_s21 = scalar_lea.hbm %s3780_s2, 96 }
  0x2a   : > { %p2869_p11 = scmp.ne.s32.totalorder %s3780_s2, %s2868_s21  ;;  %p2875_p4 = scmp.lt.u32.totalorder %s2868_s21, %s3780_s2 }
  0x2c   : > { %p2871_p1 = pnand %p2869_p11, %p2842_p12 }
  0x2e   : > { %p2872_p2 = pneg %p2871_p1 }
  0x30   : > { %p2877_p6 = pnand %p2875_p4, %p2872_p2 }
  0x32   : > { %2880 = shalt.err (!%p2877_p6)
}
  0x33   : > { %s2881_s22 = scalar_lea.vmem %s3080_s25, 96  ;;  %p2889_p3 = scmp.lt.s32.totalorder %s3080_s25, %s3080_s25 }
  0x34   : > { %p2882_p8 = scmp.ne.s32.totalorder %s3080_s25, %s2881_s22  ;;  %p2890_p5 = scmp.lt.s32.totalorder %s2881_s22, %s2881_s22 }
  0x36   : > { %p2884_p13 = pnand %p2882_p8, %p2842_p12  ;;  %p2891_p7 = por %p2890_p5, %p2889_p3 }
  0x38   : > { %p2885_p0 = pneg %p2884_p13 }
  0x3a   : > { %p2892_p9 = pnand %p2891_p7, %p2885_p0 }
  0x3c   : > { %2895 = shalt.err (!%p2892_p9)
}
  0x3d   : > { %2641 = dma.hbm_to_vmem [thread:$0]  (!%p3076_p10), %s3780_s2, 96, %s3080_s25, [#allocation6]  }
  0x3e   : > { %s3130_s4 = sadd.s32 1, %s2996_s15   ;;  %s27_s23 = sadd.s32 1, %s2992_s14 }
  0x3f   : > { %s24_s5 = ssub.s32 %s2996_s15, %s3130_s4  ;;  %p34_p12 = scmp.ne.s32.totalorder %s2992_s14, %s2988_s13 }
  0x40   : > { %p25_p11 = scmp.eq.s32.totalorder %s24_s5, 0  ;;  %p35_p1 = scmp.eq.s32.totalorder %s2996_s15, 0 }
  0x41   : > { %p3789_p2 = scmp.eq.s32.totalorder %s3049_s16, 3  ;;  %p2652_p6 = scmp.lt.s32.totalorder %s2996_s15, 4 }
  0x42   : > { %s3146_s7 = scalar_select %p25_p11, %s2992_s14, %s27_s23  }
  0x43   : > { %p3140_p4 = por %p3789_p2, %p34_p12  ;;  %p36_p8 = por %p35_p1, %p34_p12 }
  0x44   : > { %s156_s8 = sand.u32 1, %s2992_s14   ;;  %s2492_s25 = sshll.u32 %s2996_s15, 13 }
  0x45   : > { %s2286_s9 = sshll.u32 %s156_s8, 9  ;;  %s3153_s17 = scalar_lea.hbm %s3778_s0, %s2492_s25 }
  0x46   : > { %s160_s21 = scalar_lea.vmem [#allocation2], %s2286_s9  ;;  %p3157_p10 = pnand %p2652_p6, %p36_p8 }
  0x47   : > { %s168_s24 = sshll.u32 %s160_s21, 4  ;;  %s3161_s27 = scalar_lea.sflag [#allocation3], %s156_s8  ;;  %s3155_s24 = int_to_ptr.vmem [resolvable:$true] %s168_s24 }
  0x48   : > { %s2896_s28 = scalar_lea.hbm %s3153_s17, 8192  ;;  %p2898_p0 = pneg %p3157_p10 }
  0x49   : > { %p2897_p13 = scmp.ne.s32.totalorder %s3153_s17, %s2896_s28  ;;  %s2901_s30 = scalar_lea.hbm %s3778_s0, 32768 }
  0x4a   : > { %p2902_p7 = scmp.lt.u32.totalorder %s3153_s17, %s3778_s0  ;;  %p2903_p9 = scmp.lt.u32.totalorder %s2901_s30, %s2896_s28 }
  0x4b   : > { %p2899_p3 = pnand %p2898_p0, %p2897_p13  ;;  %p2905_p11 = scmp.lt.u32.totalorder %s2896_s28, %s3153_s17 }
  0x4c   : > { %p2904_p12 = por %p2903_p9, %p2902_p7 }
  0x4d   : > { %p2900_p5 = pneg %p2899_p3 }
  0x4e   : > { %p2906_p1 = por %p2905_p11, %p2904_p12 }
  0x50   : > { %p2907_p2 = pnand %p2906_p1, %p2900_p5 }
  0x52   : > { %2910 = shalt.err (!%p2907_p2)
}
  0x53   : > { %s2911_s8 = scalar_lea.vmem %s3155_s24, 8192  ;;  %s3002_s9 = smov [#allocation2]  }
  0x54   : > { %p2912_p6 = scmp.ne.s32.totalorder %s3155_s24, %s2911_s8  ;;  %s2916_s25 = sshll.u32 %s3002_s9, 4  ;;  %s2917_s25 = int_to_ptr.vmem [resolvable:$false] %s2916_s25 }
  0x55   : > { %s2918_s10 = scalar_lea.vmem %s2917_s25, 16384  ;;  %p2919_p3 = scmp.lt.s32.totalorder %s3155_s24, %s2917_s25 }
  0x56   : > { %p2914_p8 = pnand %p2912_p6, %p2898_p0  ;;  %p2920_p7 = scmp.lt.s32.totalorder %s2918_s10, %s2911_s8 }
  0x58   : > { %p2915_p13 = pneg %p2914_p8  ;;  %p2921_p9 = por %p2920_p7, %p2919_p3 }
  0x5a   : > { %p2922_p12 = pnand %p2921_p9, %p2915_p13 }
  0x5c   : > { %2925 = shalt.err (!%p2922_p12)
}
  0x5d   : > { %s3003_s11 = smov 256   ;;  %s3004_s21 = smov 16  }
  0x5e   : > { %2645 = dma.hbm_to_vmem [thread:$0]  (!%p3157_p10), %s3153_s17, 8192, %s3155_s24, %s3161_s27, %s3003_s11, %s3003_s11, %s3004_s21  }
  0x5f   : > { %p3792_p0 = scmp.ne.s32.totalorder %s3787_s20, 0 }
  0x60   : > { %s3192_s28 = sand.u32 (!%p3792_p0), 1, %s2988_s13   ;;  %p3793_p5 = scmp.ne.s32.totalorder (!%p3792_p0), %s3785_s18, 0 }
  0x61   : > { %180 = sbr.rel (%p3792_p0) target bundleno = 591 (0x24f), region = 32  ;;  %s2291_s22 = sshll.u32 (!%p3792_p0), %s3192_s28, 9 }
  0x62   : > { %s183_s29 = scalar_lea.sflag (!%p3792_p0), [#allocation3], %s3192_s28  ;;  %s3196_s30 = scalar_lea.vmem (!%p3792_p0), [#allocation2], %s2291_s22 }
  0x68   : > { %2971 = dma.done.wait (%p3793_p5), %s183_s29, 8192  }
  0x69   : > { %2973 = vsyncadd (%p3793_p5), %s183_s29, 4294959104  ;;  %p3794_p10 = scmp.eq.s32.totalorder %s3049_s16, 0 }
  0x6b   : > { %2975 = dma.done.wait (%p3794_p10), [#allocation6], 12384   ;;  %p3795_p11 = pmov %p3794_p10 }
  0x6c   : > { %v2696_v0 = vld [vmem:[#allocation5 + $0x4] ss:$24 sps:$4 sm:$0xff]   ;;  %v2698_v1 = vld [vmem:[#allocation5] ss:$24 sps:$4 sm:$0xff]   ;;  %v2699_v2 = vld [vmem:[#allocation5 + $0x34] ss:$24 sps:$4 sm:$0xff]  }
  0x6d   : > { %2977 = vsyncadd (%p3795_p11), [#allocation6], 4294954912  ;;  %923 = vmatprep.subr.bf16.mxu0 %v2696_v0  ;;  %2589 = vmatprep.subr.bf16.mxu1 %v2696_v0  ;;  %v2701_v3 = vld [vmem:[#allocation5 + $0x30] ss:$24 sps:$4 sm:$0xff]   ;;  %v2702_v4 = vld [vmem:[#allocation5 + $0x64] ss:$24 sps:$4 sm:$0xff]  }
  0x6e   : > { %924 = vmatpush1.bf16.msra.mxu0 %v2698_v1  ;;  %2605 = vmatpush1.bf16.msra.mxu1 %v2698_v1  ;;  %v2704_v5 = vld [vmem:[#allocation5 + $0x60] ss:$24 sps:$4 sm:$0xff]   ;;  %v2705_v6 = vld [vmem:[#allocation5 + $0x94] ss:$24 sps:$4 sm:$0xff]   ;;  %v2707_v7 = vld [vmem:[#allocation5 + $0x90] ss:$24 sps:$4 sm:$0xff]  }
  0x6f   : > { %925 = vmatprep.subr.bf16.mxu0 %v2699_v2  ;;  %2590 = vmatprep.subr.bf16.mxu1 %v2699_v2  ;;  %v2708_v8 = vld [vmem:[#allocation5 + $0xc4] ss:$24 sps:$4 sm:$0xff]   ;;  %v2710_v9 = vld [vmem:[#allocation5 + $0xc0] ss:$24 sps:$4 sm:$0xff]   ;;  %v2711_v10 = vld [vmem:[#allocation5 + $0xf4] ss:$24 sps:$4 sm:$0xff]  }
  0x70   : > { %v2713_v11 = vld [vmem:[#allocation5 + $0xf0] ss:$24 sps:$4 sm:$0xff]   ;;  %v2714_v12 = vld [vmem:[#allocation5 + $0x124] ss:$24 sps:$4 sm:$0xff]   ;;  %v2716_v18 = vld [vmem:[#allocation5 + $0x120] ss:$24 sps:$4 sm:$0xff]  }
  0x71   : > { %v220_v13 = vld [vmem:[%s3196_s30 + $0x8] sm:$0xff]  ;;  %v222_v14 = vld [vmem:[%s3196_s30 + $0x18] sm:$0xff]  ;;  %v219_v38 = vld [vmem:[%s3196_s30] sm:$0xff]  ;;  %s2621_s18 = smul.u32 768, %s3192_s28  ;;  %s2175_s23 = scalar_lea.sflag [#allocation4], %s3192_s28 }
  0x72   : > { %926 = vmatpush1.bf16.msra.mxu0 %v2701_v3  ;;  %2606 = vmatpush1.bf16.msra.mxu1 %v2701_v3  ;;  %v3208_v15 = vpack.c.bf16 %v222_v14, %v220_v13  ;;  %v252_v16 = vld [vmem:[%s3196_s30 + $0x108] sm:$0xff]  ;;  %v254_v17 = vld [vmem:[%s3196_s30 + $0x118] sm:$0xff]  ;;  %v221_v39 = vld [vmem:[%s3196_s30 + $0x10] sm:$0xff]  ;;  %s2622_s17 = smul.u32 12288, %s3049_s16  ;;  %s3005_s8 = smov [#allocation8]  }
  0x73   : > { %927 = vmatprep.subr.bf16.mxu0 %v2702_v4  ;;  %2591 = vmatprep.subr.bf16.mxu1 %v2702_v4  ;;  %v3212_v19 = vpack.c.bf16 %v254_v17, %v252_v16  ;;  %v2717_v20 = vld [vmem:[#allocation5 + $0x154] ss:$24 sps:$4 sm:$0xff]   ;;  %v2719_v21 = vld [vmem:[#allocation5 + $0x150] ss:$24 sps:$4 sm:$0xff]   ;;  %v2720_v22 = vld [vmem:[#allocation5 + $0x184] ss:$24 sps:$4 sm:$0xff]   ;;  %v3221_v45 = vpack.c.bf16 %v221_v39, %v219_v38 }
  0x74   : > { %955 = vmatprep.mubr.bf16.mxu0 %v3208_v15  ;;  %v2722_v23 = vld [vmem:[#allocation5 + $0x180] ss:$24 sps:$4 sm:$0xff]   ;;  %v2723_v24 = vld [vmem:[#allocation5 + $0x1b4] ss:$24 sps:$4 sm:$0xff]   ;;  %v2725_v25 = vld [vmem:[#allocation5 + $0x1b0] ss:$24 sps:$4 sm:$0xff]   ;;  %s3729_s27 = scalar_lea.hbm %s3781_s3, %s2622_s17 }
  0x75   : > { %1035 = vmatprep.mubr.bf16.mxu1 %v3212_v19  ;;  %v2726_v26 = vld [vmem:[#allocation5 + $0x1e4] ss:$24 sps:$4 sm:$0xff]   ;;  %v2728_v27 = vld [vmem:[#allocation5 + $0x1e0] ss:$24 sps:$4 sm:$0xff]   ;;  %v2729_v28 = vld [vmem:[#allocation5 + $0x214] ss:$24 sps:$4 sm:$0xff]  }
  0x76   : > { %928 = vmatpush1.bf16.msra.mxu0 %v2704_v5  ;;  %2607 = vmatpush1.bf16.msra.mxu1 %v2704_v5  ;;  %v2731_v29 = vld [vmem:[#allocation5 + $0x210] ss:$24 sps:$4 sm:$0xff]   ;;  %v2732_v30 = vld [vmem:[#allocation5 + $0x244] ss:$24 sps:$4 sm:$0xff]   ;;  %v2734_v31 = vld [vmem:[#allocation5 + $0x240] ss:$24 sps:$4 sm:$0xff]  }
  0x77   : > { %929 = vmatprep.subr.bf16.mxu0 %v2705_v6  ;;  %2592 = vmatprep.subr.bf16.mxu1 %v2705_v6  ;;  %v2735_v32 = vld [vmem:[#allocation5 + $0x274] ss:$24 sps:$4 sm:$0xff]   ;;  %v2737_v33 = vld [vmem:[#allocation5 + $0x270] ss:$24 sps:$4 sm:$0xff]   ;;  %v2738_v34 = vld [vmem:[#allocation5 + $0x2a4] ss:$24 sps:$4 sm:$0xff]  }
  0x78   : > { %v2740_v35 = vld [vmem:[#allocation5 + $0x2a0] ss:$24 sps:$4 sm:$0xff]   ;;  %v2741_v36 = vld [vmem:[#allocation5 + $0x2d4] ss:$24 sps:$4 sm:$0xff]   ;;  %v2743_v37 = vld [vmem:[#allocation5 + $0x2d0] ss:$24 sps:$4 sm:$0xff]  }
  0x79   : > { %v251_v40 = vld [vmem:[%s3196_s30 + $0x100] sm:$0xff]  ;;  %v253_v41 = vld [vmem:[%s3196_s30 + $0x110] sm:$0xff]  ;;  %v224_v44 = vld [vmem:[%s3196_s30 + $0x28] sm:$0xff]  ;;  %s3446_s20 = scalar_lea.vmem [#allocation8], %s2621_s18  ;;  %s2930_s9 = sshll.u32 %s3005_s8, 4  ;;  %s2931_s9 = int_to_ptr.vmem [resolvable:$false] %s2930_s9 }
  0x7a   : > { %930 = vmatpush1.bf16.msra.mxu0 %v2707_v7  ;;  %2608 = vmatpush1.bf16.msra.mxu1 %v2707_v7  ;;  %v2746_v42 = vld [vmem:[#allocation5 + $0xc] ss:$24 sps:$4 sm:$0xff]   ;;  %v3223_v46 = vpack.c.bf16 %v253_v41, %v251_v40  ;;  %v226_v47 = vld [vmem:[%s3196_s30 + $0x38] sm:$0xff]  ;;  %v2744_v50 = vld [vmem:[#allocation5 + $0x8] ss:$24 sps:$4 sm:$0xff]   ;;  %s2189_s24 = sshll.u32 %s3446_s20, 4  ;;  %s3731_s24 = int_to_ptr.vmem [resolvable:$true] %s2189_s24 }
  0x7b   : > { %931 = vmatprep.subr.bf16.mxu0 %v2708_v8  ;;  %2593 = vmatprep.subr.bf16.mxu1 %v2708_v8  ;;  %v2749_v43 = vld [vmem:[#allocation5 + $0x14] ss:$24 sps:$4 sm:$0xff]   ;;  %v258_v49 = vld [vmem:[%s3196_s30 + $0x138] sm:$0xff]  ;;  %v2747_v51 = vld [vmem:[#allocation5 + $0x10] ss:$24 sps:$4 sm:$0xff]   ;;  %v3228_v56 = vpack.c.bf16 %v226_v47, %v224_v44  ;;  %s2926_s5 = scalar_lea.vmem %s3731_s24, 12288  ;;  %p2933_p8 = scmp.lt.s32.totalorder %s3731_s24, %s2931_s9 }
  0x7c   : > { %v256_v48 = vld [vmem:[%s3196_s30 + $0x128] sm:$0xff]  ;;  %v2752_v52 = vld [vmem:[#allocation5 + $0x3c] ss:$24 sps:$4 sm:$0xff]   ;;  %v2750_v54 = vld [vmem:[#allocation5 + $0x38] ss:$24 sps:$4 sm:$0xff]   ;;  %p2927_p1 = scmp.ne.s32.totalorder %s3731_s24, %s2926_s5  ;;  %s2932_s25 = scalar_lea.vmem %s2931_s9, 24576 }
  0x7d   : > { %v2755_v53 = vld [vmem:[#allocation5 + $0x44] ss:$24 sps:$4 sm:$0xff]   ;;  %v2753_v55 = vld [vmem:[#allocation5 + $0x40] ss:$24 sps:$4 sm:$0xff]   ;;  %v3230_v57 = vpack.c.bf16 %v258_v49, %v256_v48  ;;  %v225_v59 = vld [vmem:[%s3196_s30 + $0x30] sm:$0xff]  ;;  %p2934_p13 = scmp.lt.s32.totalorder %s2932_s25, %s2926_s5 }
  0x7e   : > { %932 = vmatpush1.bf16.msra.mxu0 %v2710_v9  ;;  %2609 = vmatpush1.bf16.msra.mxu1 %v2710_v9  ;;  %v223_v58 = vld [vmem:[%s3196_s30 + $0x20] sm:$0xff]  ;;  %v257_v61 = vld [vmem:[%s3196_s30 + $0x130] sm:$0xff]  ;;  %v228_v0 = vld [vmem:[%s3196_s30 + $0x48] sm:$0xff]  ;;  %p2928_p2 = pnand %p2927_p1, %p3140_p4 }
  0x7f   : > { %933 = vmatprep.subr.bf16.mxu0 %v2711_v10  ;;  %2594 = vmatprep.subr.bf16.mxu1 %v2711_v10  ;;  %v255_v60 = vld [vmem:[%s3196_s30 + $0x120] sm:$0xff]  ;;  %v2761_v63 = vld [vmem:[#allocation5 + $0x74] ss:$24 sps:$4 sm:$0xff]   ;;  %v3241_v1 = vpack.c.bf16 %v225_v59, %v223_v58  ;;  %v230_v3 = vld [vmem:[%s3196_s30 + $0x58] sm:$0xff]  ;;  %p2935_p3 = por %p2934_p13, %p2933_p8 }
  0x80   : > { %v2758_v62 = vld [vmem:[#allocation5 + $0x6c] ss:$24 sps:$4 sm:$0xff]   ;;  %v3243_v2 = vpack.c.bf16 %v257_v61, %v255_v60  ;;  %v262_v5 = vld [vmem:[%s3196_s30 + $0x158] sm:$0xff]  ;;  %v2756_v6 = vld [vmem:[#allocation5 + $0x68] ss:$24 sps:$4 sm:$0xff]   ;;  %p2929_p6 = pneg %p2928_p2 }
  0x81   : > { %v260_v4 = vld [vmem:[%s3196_s30 + $0x148] sm:$0xff]  ;;  %v2764_v8 = vld [vmem:[#allocation5 + $0x9c] ss:$24 sps:$4 sm:$0xff]   ;;  %v2762_v10 = vld [vmem:[#allocation5 + $0x98] ss:$24 sps:$4 sm:$0xff]  }
  0x82   : > { %934 = vmatpush1.bf16.msra.mxu0 %v2713_v11  ;;  %2610 = vmatpush1.bf16.msra.mxu1 %v2713_v11  ;;  %v2759_v7 = vld [vmem:[#allocation5 + $0x70] ss:$24 sps:$4 sm:$0xff]   ;;  %v2767_v9 = vld [vmem:[#allocation5 + $0xa4] ss:$24 sps:$4 sm:$0xff]   ;;  %v2765_v11 = vld [vmem:[#allocation5 + $0xa0] ss:$24 sps:$4 sm:$0xff]   ;;  %v3250_v13 = vpack.c.bf16 %v262_v5, %v260_v4  ;;  %p2936_p7 = pnand %p2935_p3, %p2929_p6 }
  0x83   : > { %935 = vmatprep.subr.bf16.mxu0 %v2714_v12  ;;  %2595 = vmatprep.subr.bf16.mxu1 %v2714_v12  ;;  %v3248_v12 = vpack.c.bf16 %v230_v3, %v228_v0  ;;  %v227_v14 = vld [vmem:[%s3196_s30 + $0x40] sm:$0xff]  ;;  %v229_v16 = vld [vmem:[%s3196_s30 + $0x50] sm:$0xff]  ;;  %v238_v47 = vld [vmem:[%s3196_s30 + $0x98] sm:$0xff] }
  0x84   : > { %v259_v17 = vld [vmem:[%s3196_s30 + $0x140] sm:$0xff]  ;;  %v265_v39 = vld [vmem:[%s3196_s30 + $0x170] sm:$0xff]  ;;  %v268_v48 = vld [vmem:[%s3196_s30 + $0x188] sm:$0xff] }
  0x85   : > { %v263_v38 = vld [vmem:[%s3196_s30 + $0x160] sm:$0xff]  ;;  %v2785_v41 = vld [vmem:[#allocation5 + $0x134] ss:$24 sps:$4 sm:$0xff]   ;;  %v270_v49 = vld [vmem:[%s3196_s30 + $0x198] sm:$0xff] }
  0x86   : > { %936 = vmatpush1.bf16.msra.mxu0 %v2716_v18  ;;  %2611 = vmatpush1.bf16.msra.mxu1 %v2716_v18  ;;  %v261_v18 = vld [vmem:[%s3196_s30 + $0x150] sm:$0xff]  ;;  %v2782_v40 = vld [vmem:[#allocation5 + $0x12c] ss:$24 sps:$4 sm:$0xff]   ;;  %v3283_v44 = vpack.c.bf16 %v265_v39, %v263_v38  ;;  %v2789_v59 = vld [vmem:[#allocation5 + $0x160] ss:$24 sps:$4 sm:$0xff]  }
  0x87   : > { %937 = vmatprep.subr.bf16.mxu0 %v2717_v20  ;;  %2596 = vmatprep.subr.bf16.mxu1 %v2717_v20  ;;  %v2770_v20 = vld [vmem:[#allocation5 + $0xcc] ss:$24 sps:$4 sm:$0xff]   ;;  %v2786_v58 = vld [vmem:[#allocation5 + $0x158] ss:$24 sps:$4 sm:$0xff]   ;;  %v2804_v38 = vld [vmem:[#allocation5 + $0x1e8] ss:$24 sps:$4 sm:$0xff]  }
  0x88   : > { %v235_v60 = vld [vmem:[%s3196_s30 + $0x80] sm:$0xff]  ;;  %v237_v61 = vld [vmem:[%s3196_s30 + $0x90] sm:$0xff]  ;;  %v240_v4 = vld [vmem:[%s3196_s30 + $0xa8] sm:$0xff] }
  0x89   : > { %v2794_v0 = vld [vmem:[#allocation5 + $0x18c] ss:$24 sps:$4 sm:$0xff]   ;;  %v3301_v5 = vpack.c.bf16 %v237_v61, %v235_v60  ;;  %v2807_v39 = vld [vmem:[#allocation5 + $0x1f0] ss:$24 sps:$4 sm:$0xff]  }
  0x8a   : > { %938 = vmatpush1.bf16.msra.mxu0 %v2719_v21  ;;  %2612 = vmatpush1.bf16.msra.mxu1 %v2719_v21  ;;  %v2773_v21 = vld [vmem:[#allocation5 + $0xd4] ss:$24 sps:$4 sm:$0xff]  }
  0x8b   : > { %939 = vmatprep.subr.bf16.mxu0 %v2720_v22  ;;  %2597 = vmatprep.subr.bf16.mxu1 %v2720_v22  ;;  %v232_v22 = vld [vmem:[%s3196_s30 + $0x68] sm:$0xff] }
  0x8c   : > { %v2797_v3 = vld [vmem:[#allocation5 + $0x194] ss:$24 sps:$4 sm:$0xff]  }
  0x8d   : > { %v248_v60 = vld [vmem:[%s3196_s30 + $0xe8] sm:$0xff] }
  0x8e   : > { %940 = vmatpush1.bf16.msra.mxu0 %v2722_v23  ;;  %2613 = vmatpush1.bf16.msra.mxu1 %v2722_v23  ;;  %v3261_v23 = vpack.c.bf16 %v229_v16, %v227_v14  ;;  %v2800_v14 = vld [vmem:[#allocation5 + $0x1bc] ss:$24 sps:$4 sm:$0xff]  }
  0x8f   : > { %941 = vmatprep.subr.bf16.mxu0 %v2723_v24  ;;  %2598 = vmatprep.subr.bf16.mxu1 %v2723_v24  ;;  %v3263_v24 = vpack.c.bf16 %v261_v18, %v259_v17  ;;  %v2803_v16 = vld [vmem:[#allocation5 + $0x1c4] ss:$24 sps:$4 sm:$0xff]  }
  0x92   : > { %942 = vmatpush1.bf16.msra.mxu0 %v2725_v25  ;;  %2614 = vmatpush1.bf16.msra.mxu1 %v2725_v25  ;;  %v234_v25 = vld [vmem:[%s3196_s30 + $0x78] sm:$0xff] }
  0x93   : > { %943 = vmatprep.subr.bf16.mxu0 %v2726_v26  ;;  %2599 = vmatprep.subr.bf16.mxu1 %v2726_v26  ;;  %v264_v26 = vld [vmem:[%s3196_s30 + $0x168] sm:$0xff] }
  0x96   : > { %944 = vmatpush1.bf16.msra.mxu0 %v2728_v27  ;;  %2615 = vmatpush1.bf16.msra.mxu1 %v2728_v27  ;;  %v266_v27 = vld [vmem:[%s3196_s30 + $0x178] sm:$0xff] }
  0x97   : > { %945 = vmatprep.subr.bf16.mxu0 %v2729_v28  ;;  %2600 = vmatprep.subr.bf16.mxu1 %v2729_v28  ;;  %v2768_v28 = vld [vmem:[#allocation5 + $0xc8] ss:$24 sps:$4 sm:$0xff]  }
  0x9a   : > { %946 = vmatpush1.bf16.msra.mxu0 %v2731_v29  ;;  %2616 = vmatpush1.bf16.msra.mxu1 %v2731_v29  ;;  %v2771_v29 = vld [vmem:[#allocation5 + $0xd0] ss:$24 sps:$4 sm:$0xff]  }
  0x9b   : > { %947 = vmatprep.subr.bf16.mxu0 %v2732_v30  ;;  %2601 = vmatprep.subr.bf16.mxu1 %v2732_v30  ;;  %v2776_v30 = vld [vmem:[#allocation5 + $0xfc] ss:$24 sps:$4 sm:$0xff]  }
  0x9e   : > { %948 = vmatpush1.bf16.msra.mxu0 %v2734_v31  ;;  %2617 = vmatpush1.bf16.msra.mxu1 %v2734_v31  ;;  %v2779_v31 = vld [vmem:[#allocation5 + $0x104] ss:$24 sps:$4 sm:$0xff]  }
  0x9f   : > { %949 = vmatprep.subr.bf16.mxu0 %v2735_v32  ;;  %2602 = vmatprep.subr.bf16.mxu1 %v2735_v32  ;;  %v2774_v32 = vld [vmem:[#allocation5 + $0xf8] ss:$24 sps:$4 sm:$0xff]  }
  0xa2   : > { %950 = vmatpush1.bf16.msra.mxu0 %v2737_v33  ;;  %2618 = vmatpush1.bf16.msra.mxu1 %v2737_v33  ;;  %v2777_v33 = vld [vmem:[#allocation5 + $0x100] ss:$24 sps:$4 sm:$0xff]  }
  0xa3   : > { %951 = vmatprep.subr.bf16.mxu0 %v2738_v34  ;;  %2603 = vmatprep.subr.bf16.mxu1 %v2738_v34  ;;  %v3268_v34 = vpack.c.bf16 %v234_v25, %v232_v22  ;;  %v239_v22 = vld [vmem:[%s3196_s30 + $0xa0] sm:$0xff]  ;;  %v241_v25 = vld [vmem:[%s3196_s30 + $0xb0] sm:$0xff] }
  0xa6   : > { %952 = vmatpush1.bf16.msra.mxu0 %v2740_v35  ;;  %2619 = vmatpush1.bf16.msra.mxu1 %v2740_v35  ;;  %v3270_v35 = vpack.c.bf16 %v266_v27, %v264_v26  ;;  %v271_v26 = vld [vmem:[%s3196_s30 + $0x1a0] sm:$0xff]  ;;  %v273_v27 = vld [vmem:[%s3196_s30 + $0x1b0] sm:$0xff] }
  0xa7   : > { %953 = vmatprep.subr.bf16.mxu0 %v2741_v36  ;;  %2604 = vmatprep.subr.bf16.mxu1 %v2741_v36  ;;  %v231_v36 = vld [vmem:[%s3196_s30 + $0x60] sm:$0xff] }
  0xaa   : > { %954 = vmatpush1.bf16.msra.mxu0 %v2743_v37  ;;  %2620 = vmatpush1.bf16.msra.mxu1 %v2743_v37  ;;  %v233_v37 = vld [vmem:[%s3196_s30 + $0x70] sm:$0xff] }
  0xab   : > { %1116 = vmatprep.subr.bf16.mxu1 %v2746_v42  ;;  %1309 = vmatprep.subr.bf16.mxu0 %v2749_v43  ;;  %v236_v42 = vld [vmem:[%s3196_s30 + $0x88] sm:$0xff]  ;;  %v3281_v43 = vpack.c.bf16 %v233_v37, %v231_v36  ;;  %v278_v37 = vld [vmem:[%s3196_s30 + $0x1d8] sm:$0xff] }
  0xac   : > { %v276_v36 = vld [vmem:[%s3196_s30 + $0x1c8] sm:$0xff] }
  0xad   : > { %956 = vmatmul.mubr.bf16.vlgmr.msra.gmra.mrb[0].mxu0 %v3221_v45  ;;  %1036 = vmatmul.mubr.bf16.vlgmr.msra.gmra.mrb[0].mxu1 %v3223_v46 }
  0xae   : > { %1117 = vmatpush1.bf16.msra.mxu1 %v2744_v50  ;;  %1310 = vmatpush1.bf16.msra.mxu0 %v2747_v51  ;;  %v2780_v50 = vld [vmem:[#allocation5 + $0x128] ss:$24 sps:$4 sm:$0xff]  }
  0xaf   : > { %1118 = vmatprep.subr.bf16.mxu1 %v2752_v52  ;;  %1311 = vmatprep.subr.bf16.mxu0 %v2755_v53  ;;  %v2783_v51 = vld [vmem:[#allocation5 + $0x130] ss:$24 sps:$4 sm:$0xff]   ;;  %v2788_v52 = vld [vmem:[#allocation5 + $0x15c] ss:$24 sps:$4 sm:$0xff]  }
  0xb0   : > { %965 = vmatprep.mubr.bf16.mxu0 %v3228_v56  ;;  %1045 = vmatprep.mubr.bf16.mxu1 %v3230_v57  ;;  %v2791_v53 = vld [vmem:[#allocation5 + $0x164] ss:$24 sps:$4 sm:$0xff]  }
  0xb2   : > { %1119 = vmatpush1.bf16.msra.mxu1 %v2750_v54  ;;  %1312 = vmatpush1.bf16.msra.mxu0 %v2753_v55  ;;  %v3288_v54 = vpack.c.bf16 %v238_v47, %v236_v42  ;;  %v3290_v55 = vpack.c.bf16 %v270_v49, %v268_v48  ;;  %v3330_v47 = vpack.c.bf16 %v278_v37, %v276_v36  ;;  %v2810_v48 = vld [vmem:[#allocation5 + $0x218] ss:$24 sps:$4 sm:$0xff]   ;;  %v2836_v36 = vld [vmem:[#allocation5 + $0x2dc] ss:$24 sps:$4 sm:$0xff]  }
  0xb3   : > { %1120 = vmatprep.subr.bf16.mxu1 %v2758_v62  ;;  %1313 = vmatprep.subr.bf16.mxu0 %v2761_v63  ;;  %v267_v62 = vld [vmem:[%s3196_s30 + $0x180] sm:$0xff]  ;;  %v269_v63 = vld [vmem:[%s3196_s30 + $0x190] sm:$0xff] }
  0xb4   : > { %v2813_v49 = vld [vmem:[#allocation5 + $0x220] ss:$24 sps:$4 sm:$0xff]   ;;  %v2839_v37 = vld [vmem:[#allocation5 + $0x2e4] ss:$24 sps:$4 sm:$0xff]  }
  0xb5   : > { %966 = vmatmul.mubr.bf16.gmra.mrb[4].mxu0 %v3241_v1  ;;  %1046 = vmatmul.mubr.bf16.gmra.mrb[4].mxu1 %v3243_v2 }
  0xb6   : > { %1121 = vmatpush1.bf16.msra.mxu1 %v2756_v6  ;;  %1314 = vmatpush1.bf16.msra.mxu0 %v2759_v7  ;;  %v3303_v6 = vpack.c.bf16 %v269_v63, %v267_v62  ;;  %v242_v7 = vld [vmem:[%s3196_s30 + $0xb8] sm:$0xff] }
  0xb7   : > { %1122 = vmatprep.subr.bf16.mxu1 %v2764_v8  ;;  %1315 = vmatprep.subr.bf16.mxu0 %v2767_v9  ;;  %v272_v8 = vld [vmem:[%s3196_s30 + $0x1a8] sm:$0xff]  ;;  %v274_v9 = vld [vmem:[%s3196_s30 + $0x1b8] sm:$0xff]  ;;  %v3308_v17 = vpack.c.bf16 %v242_v7, %v240_v4 }
  0xb8   : > { %975 = vmatprep.mubr.bf16.mxu0 %v3248_v12  ;;  %1055 = vmatprep.mubr.bf16.mxu1 %v3250_v13  ;;  %v3310_v18 = vpack.c.bf16 %v274_v9, %v272_v8  ;;  %v250_v63 = vld [vmem:[%s3196_s30 + $0xf8] sm:$0xff]  ;;  %v2816_v4 = vld [vmem:[#allocation5 + $0x248] ss:$24 sps:$4 sm:$0xff]  }
  0xb9   : > { %v2819_v7 = vld [vmem:[#allocation5 + $0x250] ss:$24 sps:$4 sm:$0xff]   ;;  %v2824_v8 = vld [vmem:[#allocation5 + $0x27c] ss:$24 sps:$4 sm:$0xff]  }
  0xba   : > { %1123 = vmatpush1.bf16.msra.mxu1 %v2762_v10  ;;  %1316 = vmatpush1.bf16.msra.mxu0 %v2765_v11  ;;  %v2792_v10 = vld [vmem:[#allocation5 + $0x188] ss:$24 sps:$4 sm:$0xff]   ;;  %v2827_v9 = vld [vmem:[#allocation5 + $0x284] ss:$24 sps:$4 sm:$0xff]  }
  0xbb   : > { %1124 = vmatprep.subr.bf16.mxu1 %v2770_v20  ;;  %1317 = vmatprep.subr.bf16.mxu0 %v2773_v21  ;;  %v2795_v11 = vld [vmem:[#allocation5 + $0x190] ss:$24 sps:$4 sm:$0xff]   ;;  %v2801_v21 = vld [vmem:[#allocation5 + $0x1c0] ss:$24 sps:$4 sm:$0xff]  }
  0xbc   : > { %v2798_v20 = vld [vmem:[#allocation5 + $0x1b8] ss:$24 sps:$4 sm:$0xff]  }
  0xbd   : > { %976 = vmatmul.mubr.bf16.gmra.mrb[8].mxu0 %v3261_v23  ;;  %1056 = vmatmul.mubr.bf16.gmra.mrb[8].mxu1 %v3263_v24 }
  0xbe   : > { %1125 = vmatpush1.bf16.msra.mxu1 %v2768_v28  ;;  %1318 = vmatpush1.bf16.msra.mxu0 %v2771_v29  ;;  %v2806_v28 = vld [vmem:[#allocation5 + $0x1ec] ss:$24 sps:$4 sm:$0xff]  }
  0xbf   : > { %1126 = vmatprep.subr.bf16.mxu1 %v2776_v30  ;;  %1319 = vmatprep.subr.bf16.mxu0 %v2779_v31  ;;  %v2809_v29 = vld [vmem:[#allocation5 + $0x1f4] ss:$24 sps:$4 sm:$0xff]   ;;  %v3321_v31 = vpack.c.bf16 %v241_v25, %v239_v22  ;;  %v279_v22 = vld [vmem:[%s3196_s30 + $0x1e0] sm:$0xff] }
  0xc0   : > { %985 = vmatprep.mubr.bf16.mxu0 %v3268_v34  ;;  %1065 = vmatprep.mubr.bf16.mxu1 %v3270_v35  ;;  %v244_v30 = vld [vmem:[%s3196_s30 + $0xc8] sm:$0xff]  ;;  %v281_v25 = vld [vmem:[%s3196_s30 + $0x1f0] sm:$0xff] }
  0xc2   : > { %1127 = vmatpush1.bf16.msra.mxu1 %v2774_v32  ;;  %1320 = vmatpush1.bf16.msra.mxu0 %v2777_v33  ;;  %v3323_v32 = vpack.c.bf16 %v273_v27, %v271_v26  ;;  %v246_v33 = vld [vmem:[%s3196_s30 + $0xd8] sm:$0xff]  ;;  %v2830_v26 = vld [vmem:[#allocation5 + $0x2ac] ss:$24 sps:$4 sm:$0xff]  }
  0xc3   : > { %1128 = vmatprep.subr.bf16.mxu1 %v2782_v40  ;;  %1321 = vmatprep.subr.bf16.mxu0 %v2785_v41  ;;  %v2812_v40 = vld [vmem:[#allocation5 + $0x21c] ss:$24 sps:$4 sm:$0xff]   ;;  %v3328_v42 = vpack.c.bf16 %v246_v33, %v244_v30  ;;  %v2828_v30 = vld [vmem:[#allocation5 + $0x2a8] ss:$24 sps:$4 sm:$0xff]  }
  0xc4   : > { %v2815_v41 = vld [vmem:[#allocation5 + $0x224] ss:$24 sps:$4 sm:$0xff]   ;;  %v2833_v27 = vld [vmem:[#allocation5 + $0x2b4] ss:$24 sps:$4 sm:$0xff]   ;;  %v2831_v33 = vld [vmem:[#allocation5 + $0x2b0] ss:$24 sps:$4 sm:$0xff]  }
  0xc5   : > { %986 = vmatmul.mubr.bf16.gmra.mrb[12].mxu0 %v3281_v43  ;;  %1066 = vmatmul.mubr.bf16.gmra.mrb[12].mxu1 %v3283_v44 }
  0xc6   : > { %1129 = vmatpush1.bf16.msra.mxu1 %v2780_v50  ;;  %1322 = vmatpush1.bf16.msra.mxu0 %v2783_v51  ;;  %v243_v50 = vld [vmem:[%s3196_s30 + $0xc0] sm:$0xff]  ;;  %v245_v51 = vld [vmem:[%s3196_s30 + $0xd0] sm:$0xff] }
  0xc7   : > { %1130 = vmatprep.subr.bf16.mxu1 %v2788_v52  ;;  %1323 = vmatprep.subr.bf16.mxu0 %v2791_v53  ;;  %v275_v52 = vld [vmem:[%s3196_s30 + $0x1c0] sm:$0xff]  ;;  %v277_v53 = vld [vmem:[%s3196_s30 + $0x1d0] sm:$0xff]  ;;  %v3341_v61 = vpack.c.bf16 %v245_v51, %v243_v50 }
  0xc8   : > { %995 = vmatprep.mubr.bf16.mxu0 %v3288_v54  ;;  %1075 = vmatprep.mubr.bf16.mxu1 %v3290_v55  ;;  %v3343_v62 = vpack.c.bf16 %v277_v53, %v275_v52 }
  0xca   : > { %1131 = vmatpush1.bf16.msra.mxu1 %v2786_v58  ;;  %1324 = vmatpush1.bf16.msra.mxu0 %v2789_v59  ;;  %v2818_v58 = vld [vmem:[#allocation5 + $0x24c] ss:$24 sps:$4 sm:$0xff]  }
  0xcb   : > { %1132 = vmatprep.subr.bf16.mxu1 %v2794_v0  ;;  %1325 = vmatprep.subr.bf16.mxu0 %v2797_v3  ;;  %v2821_v59 = vld [vmem:[#allocation5 + $0x254] ss:$24 sps:$4 sm:$0xff]   ;;  %v282_v3 = vld [vmem:[%s3196_s30 + $0x1f8] sm:$0xff] }
  0xcc   : > { %v280_v0 = vld [vmem:[%s3196_s30 + $0x1e8] sm:$0xff] }
  0xcd   : > { %996 = vmatmul.mubr.bf16.gmra.mrb[16].mxu0 %v3301_v5  ;;  %1076 = vmatmul.mubr.bf16.gmra.mrb[16].mxu1 %v3303_v6 }
  0xce   : > { %1133 = vmatpush1.bf16.msra.mxu1 %v2792_v10  ;;  %1326 = vmatpush1.bf16.msra.mxu0 %v2795_v11  ;;  %v3348_v10 = vpack.c.bf16 %v250_v63, %v248_v60  ;;  %v3350_v11 = vpack.c.bf16 %v282_v3, %v280_v0 }
  0xcf   : > { %1134 = vmatprep.subr.bf16.mxu1 %v2800_v14  ;;  %1327 = vmatprep.subr.bf16.mxu0 %v2803_v16  ;;  %v2822_v14 = vld [vmem:[#allocation5 + $0x278] ss:$24 sps:$4 sm:$0xff]  }
  0xd0   : > { %1005 = vmatprep.mubr.bf16.mxu0 %v3308_v17  ;;  %1085 = vmatprep.mubr.bf16.mxu1 %v3310_v18  ;;  %v2825_v16 = vld [vmem:[#allocation5 + $0x280] ss:$24 sps:$4 sm:$0xff]  }
  0xd2   : > { %1135 = vmatpush1.bf16.msra.mxu1 %v2798_v20  ;;  %1328 = vmatpush1.bf16.msra.mxu0 %v2801_v21  ;;  %v247_v20 = vld [vmem:[%s3196_s30 + $0xe0] sm:$0xff]  ;;  %v249_v21 = vld [vmem:[%s3196_s30 + $0xf0] sm:$0xff] }
  0xd3   : > { %1136 = vmatprep.subr.bf16.mxu1 %v2806_v28  ;;  %1329 = vmatprep.subr.bf16.mxu0 %v2809_v29  ;;  %v297_v28 = vpack.c.bf16 %v249_v21, %v247_v20  ;;  %v3360_v29 = vpack.c.bf16 %v281_v25, %v279_v22 }
  0xd5   : > { %1006 = vmatmul.mubr.bf16.gmra.mrb[20].mxu0 %v3321_v31  ;;  %1086 = vmatmul.mubr.bf16.gmra.mrb[20].mxu1 %v3323_v32 }
  0xd6   : > { %1137 = vmatpush1.bf16.msra.mxu1 %v2804_v38  ;;  %1330 = vmatpush1.bf16.msra.mxu0 %v2807_v39  ;;  %v2834_v38 = vld [vmem:[#allocation5 + $0x2d8] ss:$24 sps:$4 sm:$0xff]  }
  0xd7   : > { %1138 = vmatprep.subr.bf16.mxu1 %v2812_v40  ;;  %1331 = vmatprep.subr.bf16.mxu0 %v2815_v41  ;;  %v2837_v39 = vld [vmem:[#allocation5 + $0x2e0] ss:$24 sps:$4 sm:$0xff]  }
  0xd8   : > { %1015 = vmatprep.mubr.bf16.mxu0 %v3328_v42  ;;  %1095 = vmatprep.mubr.bf16.mxu1 %v3330_v47 }
  0xda   : > { %1139 = vmatpush1.bf16.msra.mxu1 %v2810_v48  ;;  %1332 = vmatpush1.bf16.msra.mxu0 %v2813_v49 }
  0xdb   : > { %1140 = vmatprep.subr.bf16.mxu1 %v2818_v58  ;;  %1333 = vmatprep.subr.bf16.mxu0 %v2821_v59 }
  0xdd   : > { %1016 = vmatmul.mubr.bf16.gmra.mrb[24].mxu0 %v3341_v61  ;;  %1096 = vmatmul.mubr.bf16.gmra.mrb[24].mxu1 %v3343_v62 }
  0xde   : > { %1141 = vmatpush1.bf16.msra.mxu1 %v2816_v4  ;;  %1334 = vmatpush1.bf16.msra.mxu0 %v2819_v7 }
  0xdf   : > { %1142 = vmatprep.subr.bf16.mxu1 %v2824_v8  ;;  %1335 = vmatprep.subr.bf16.mxu0 %v2827_v9 }
  0xe0   : > { %1025 = vmatprep.mubr.bf16.mxu0 %v3348_v10  ;;  %1105 = vmatprep.mubr.bf16.mxu1 %v3350_v11 }
  0xe2   : > { %1143 = vmatpush1.bf16.msra.mxu1 %v2822_v14  ;;  %1336 = vmatpush1.bf16.msra.mxu0 %v2825_v16 }
  0xe3   : > { %1144 = vmatprep.subr.bf16.mxu1 %v2830_v26  ;;  %1337 = vmatprep.subr.bf16.mxu0 %v2833_v27 }
  0xe5   : > { %1026 = vmatmul.mubr.bf16.gmra.mrb[28].mxu0 %v297_v28  ;;  %1106 = vmatmul.mubr.bf16.gmra.mrb[28].mxu1 %v3360_v29 }
  0xe6   : > { %1145 = vmatpush1.bf16.msra.mxu1 %v2828_v30  ;;  %1338 = vmatpush1.bf16.msra.mxu0 %v2831_v33 }
  0xe7   : > { %1146 = vmatprep.subr.bf16.mxu1 %v2836_v36  ;;  %1339 = vmatprep.subr.bf16.mxu0 %v2839_v37 }
  0xe8   : > { %1148 = vmatprep.mubr.bf16.mxu1 %v3208_v15  ;;  %1341 = vmatprep.mubr.bf16.mxu0 %v3208_v15  ;;  %v413_v15 = vlaneseq }
  0xea   : > { %1147 = vmatpush1.bf16.msra.mxu1 %v2834_v38  ;;  %1340 = vmatpush1.bf16.msra.mxu0 %v2837_v39 }
  0xed   : > { %1149 = vmatmul.mubr.bf16.vlgmr.msra.gmra.mrb[32].mxu1 %v3221_v45  ;;  %1342 = vmatmul.mubr.bf16.vlgmr.msra.gmra.mrb[32].mxu0 %v3221_v45  ;;  %v414_v45 = vshrl.u32 %v413_v15, 7 }
  0xee   : > { %1158 = vmatprep.mubr.bf16.mxu1 %v3228_v56  ;;  %1351 = vmatprep.mubr.bf16.mxu0 %v3228_v56  ;;  %v411_v56 = vld [vmem:[#allocation7] sm:$0x3f] }
  0xf5   : > { %1159 = vmatmul.mubr.bf16.gmra.mrb[36].mxu1 %v3241_v1  ;;  %1352 = vmatmul.mubr.bf16.gmra.mrb[36].mxu0 %v3241_v1  ;;  %v435_v1 = vsub.s32 5, %v414_v45 }
  0xf6   : > { %1168 = vmatprep.mubr.bf16.mxu1 %v3248_v12  ;;  %1361 = vmatprep.mubr.bf16.mxu0 %v3248_v12 }
  0xfd   : > { %1169 = vmatmul.mubr.bf16.gmra.mrb[40].mxu1 %v3261_v23  ;;  %1362 = vmatmul.mubr.bf16.gmra.mrb[40].mxu0 %v3261_v23  ;;  %v3413_v23 = vrot.slane %v411_v56, %v435_v1 }
  0xfe   : > { %1178 = vmatprep.mubr.bf16.mxu1 %v3268_v34  ;;  %1371 = vmatprep.mubr.bf16.mxu0 %v3268_v34  ;;  %v419_v34 = vsub.s32 1, %v414_v45 }
 0x105   : > { %1179 = vmatmul.mubr.bf16.gmra.mrb[44].mxu1 %v3281_v43  ;;  %1372 = vmatmul.mubr.bf16.gmra.mrb[44].mxu0 %v3281_v43  ;;  %v3435_v43 = vrot.slane %v411_v56, %v419_v34 }
 0x106   : > { %1188 = vmatprep.mubr.bf16.mxu1 %v3288_v54  ;;  %1381 = vmatprep.mubr.bf16.mxu0 %v3288_v54 }
 0x10d   : > { %1189 = vmatmul.mubr.bf16.gmra.mrb[48].mxu1 %v3301_v5  ;;  %1382 = vmatmul.mubr.bf16.gmra.mrb[48].mxu0 %v3301_v5 }
 0x10e   : > { %1198 = vmatprep.mubr.bf16.mxu1 %v3308_v17  ;;  %1391 = vmatprep.mubr.bf16.mxu0 %v3308_v17 }
 0x115   : > { %1199 = vmatmul.mubr.bf16.gmra.mrb[52].mxu1 %v3321_v31  ;;  %1392 = vmatmul.mubr.bf16.gmra.mrb[52].mxu0 %v3321_v31 }
 0x116   : > { %1208 = vmatprep.mubr.bf16.mxu1 %v3328_v42  ;;  %1401 = vmatprep.mubr.bf16.mxu0 %v3328_v42 }
 0x11d   : > { %1209 = vmatmul.mubr.bf16.gmra.mrb[56].mxu1 %v3341_v61  ;;  %1402 = vmatmul.mubr.bf16.gmra.mrb[56].mxu0 %v3341_v61 }
 0x11e   : > { %1218 = vmatprep.mubr.bf16.mxu1 %v3348_v10  ;;  %1411 = vmatprep.mubr.bf16.mxu0 %v3348_v10 }
 0x125   : > { %1219 = vmatmul.mubr.bf16.gmra.mrb[60].mxu1 %v297_v28  ;;  %1412 = vmatmul.mubr.bf16.gmra.mrb[60].mxu0 %v297_v28 }
 0x126   : > { %1228 = vmatprep.mubr.bf16.mxu1 %v3212_v19  ;;  %1421 = vmatprep.mubr.bf16.mxu0 %v3212_v19  ;;  %v423_v19 = vsub.s32 2, %v414_v45 }
 0x12d   : > { %1229 = vmatmul.mubr.bf16.gmra.mrb[64].mxu1 %v3223_v46  ;;  %1422 = vmatmul.mubr.bf16.gmra.mrb[64].mxu0 %v3223_v46  ;;  %v431_v46 = vsub.s32 4, %v414_v45 }
 0x12e   : > { %1238 = vmatprep.mubr.bf16.mxu1 %v3230_v57  ;;  %1431 = vmatprep.mubr.bf16.mxu0 %v3230_v57  ;;  %v427_v57 = vsub.s32 3, %v414_v45 }
 0x12f   : > { %v3409_v12 = vrot.slane %v411_v56, %v431_v46 }
 0x135   : > { %1239 = vmatmul.mubr.bf16.gmra.mrb[68].mxu1 %v3243_v2  ;;  %1432 = vmatmul.mubr.bf16.gmra.mrb[68].mxu0 %v3243_v2  ;;  %v3407_v2 = vrot.slane %v411_v56, %v423_v19 }
 0x136   : > { %1248 = vmatprep.mubr.bf16.mxu1 %v3250_v13  ;;  %1441 = vmatprep.mubr.bf16.mxu0 %v3250_v13  ;;  %v3411_v13 = vrot.slane %v411_v56, %v427_v57 }
 0x13d   : > { %1249 = vmatmul.mubr.bf16.gmra.mrb[72].mxu1 %v3263_v24  ;;  %1442 = vmatmul.mubr.bf16.gmra.mrb[72].mxu0 %v3263_v24  ;;  %v415_v24 = vsub.s32 0, %v414_v45 }
 0x13e   : > { %1258 = vmatprep.mubr.bf16.mxu1 %v3270_v35  ;;  %1451 = vmatprep.mubr.bf16.mxu0 %v3270_v35 }
 0x13f   : > { %v3433_v35 = vrot.slane %v411_v56, %v415_v24 }
 0x145   : > { %1259 = vmatmul.mubr.bf16.gmra.mrb[76].mxu1 %v3283_v44  ;;  %1452 = vmatmul.mubr.bf16.gmra.mrb[76].mxu0 %v3283_v44 }
 0x146   : > { %1268 = vmatprep.mubr.bf16.mxu1 %v3290_v55  ;;  %1461 = vmatprep.mubr.bf16.mxu0 %v3290_v55 }
 0x14d   : > { %1269 = vmatmul.mubr.bf16.gmra.mrb[80].mxu1 %v3303_v6  ;;  %1462 = vmatmul.mubr.bf16.gmra.mrb[80].mxu0 %v3303_v6 }
 0x14e   : > { %1278 = vmatprep.mubr.bf16.mxu1 %v3310_v18  ;;  %1471 = vmatprep.mubr.bf16.mxu0 %v3310_v18 }
 0x155   : > { %1279 = vmatmul.mubr.bf16.gmra.mrb[84].mxu1 %v3323_v32  ;;  %1472 = vmatmul.mubr.bf16.gmra.mrb[84].mxu0 %v3323_v32 }
 0x156   : > { %1288 = vmatprep.mubr.bf16.mxu1 %v3330_v47  ;;  %1481 = vmatprep.mubr.bf16.mxu0 %v3330_v47 }
 0x15d   : > { %1289 = vmatmul.mubr.bf16.gmra.mrb[88].mxu1 %v3343_v62  ;;  %1482 = vmatmul.mubr.bf16.gmra.mrb[88].mxu0 %v3343_v62 }
 0x15e   : > { %1298 = vmatprep.mubr.bf16.mxu1 %v3350_v11  ;;  %1491 = vmatprep.mubr.bf16.mxu0 %v3350_v11 }
 0x165   : > { %1299 = vmatmul.mubr.bf16.gmra.mrb[92].mxu1 %v3360_v29  ;;  %1492 = vmatmul.mubr.bf16.gmra.mrb[92].mxu0 %v3360_v29 }
 0x180   : > { %v957_v44 = vpop.f32.mrb[0].mxu0  ;;  %v1037_v54 = vpop.f32.mrb[0].mxu1 }
 0x181   : > { %v958_v55 = vadd.f32 %v957_v44, %v3433_v35  ;;  %v1038_v5 = vadd.f32 %v1037_v54, %v3433_v35  ;;  %v959_v6 = vpop.f32.mrb[1].mxu0  ;;  %v1039_v17 = vpop.f32.mrb[1].mxu1 }
 0x182   : > { %v960_v18 = vadd.f32 %v959_v6, %v3435_v43  ;;  %v1040_v31 = vadd.f32 %v1039_v17, %v3435_v43  ;;  %v961_v32 = vpop.f32.mrb[2].mxu0  ;;  %v1041_v40 = vpop.f32.mrb[2].mxu1 }
 0x183   : > { %v962_v41 = vadd.f32 %v961_v32, %v3433_v35  ;;  %v1042_v42 = vadd.f32 %v1041_v40, %v3433_v35  ;;  %v963_v47 = vpop.f32.mrb[3].mxu0  ;;  %v1043_v48 = vpop.f32.mrb[3].mxu1 }
 0x184   : > { %v2493_v49 = vpack.c.bf16 %v960_v18, %v958_v55  ;;  %v2541_v50 = vpack.c.bf16 %v1040_v31, %v1038_v5  ;;  %v964_v51 = vadd.f32 %v963_v47, %v3435_v43  ;;  %v1044_v52 = vadd.f32 %v1043_v48, %v3435_v43 }
 0x186   : > { %2078 = vst [vmem:[%s3446_s20] sm:$0xff] %v2493_v49  ;;  %2126 = vst [vmem:[%s3446_s20 + $0x180] sm:$0xff] %v2541_v50  ;;  %v2496_v53 = vpack.c.bf16 %v964_v51, %v962_v41  ;;  %v2544_v58 = vpack.c.bf16 %v1044_v52, %v1042_v42 }
 0x188   : > { %2081 = vst [vmem:[%s3446_s20 + $0x18] sm:$0xff] %v2496_v53  ;;  %2129 = vst [vmem:[%s3446_s20 + $0x198] sm:$0xff] %v2544_v58  ;;  %v967_v59 = vpop.f32.mrb[4].mxu0  ;;  %v1047_v60 = vpop.f32.mrb[4].mxu1 }
 0x189   : > { %v968_v61 = vadd.f32 %v967_v59, %v3433_v35  ;;  %v1048_v62 = vadd.f32 %v1047_v60, %v3433_v35  ;;  %v969_v63 = vpop.f32.mrb[5].mxu0  ;;  %v1049_v0 = vpop.f32.mrb[5].mxu1 }
 0x18a   : > { %v970_v3 = vadd.f32 %v969_v63, %v3435_v43  ;;  %v1050_v4 = vadd.f32 %v1049_v0, %v3435_v43  ;;  %v971_v7 = vpop.f32.mrb[6].mxu0  ;;  %v1051_v8 = vpop.f32.mrb[6].mxu1 }
 0x18b   : > { %v972_v9 = vadd.f32 %v971_v7, %v3433_v35  ;;  %v1052_v10 = vadd.f32 %v1051_v8, %v3433_v35  ;;  %v973_v11 = vpop.f32.mrb[7].mxu0  ;;  %v1053_v14 = vpop.f32.mrb[7].mxu1 }
 0x18c   : > { %v2499_v16 = vpack.c.bf16 %v970_v3, %v968_v61  ;;  %v2547_v20 = vpack.c.bf16 %v1050_v4, %v1048_v62  ;;  %v974_v21 = vadd.f32 %v973_v11, %v3435_v43  ;;  %v1054_v22 = vadd.f32 %v1053_v14, %v3435_v43 }
 0x18e   : > { %2084 = vst [vmem:[%s3446_s20 + $0x30] sm:$0xff] %v2499_v16  ;;  %2132 = vst [vmem:[%s3446_s20 + $0x1b0] sm:$0xff] %v2547_v20  ;;  %v2502_v25 = vpack.c.bf16 %v974_v21, %v972_v9  ;;  %v2550_v26 = vpack.c.bf16 %v1054_v22, %v1052_v10 }
 0x190   : > { %2087 = vst [vmem:[%s3446_s20 + $0x48] sm:$0xff] %v2502_v25  ;;  %2135 = vst [vmem:[%s3446_s20 + $0x1c8] sm:$0xff] %v2550_v26  ;;  %v977_v27 = vpop.f32.mrb[8].mxu0  ;;  %v1057_v28 = vpop.f32.mrb[8].mxu1 }
 0x191   : > { %v978_v29 = vadd.f32 %v977_v27, %v3433_v35  ;;  %v1058_v30 = vadd.f32 %v1057_v28, %v3433_v35  ;;  %v979_v33 = vpop.f32.mrb[9].mxu0  ;;  %v1059_v36 = vpop.f32.mrb[9].mxu1 }
 0x192   : > { %v980_v37 = vadd.f32 %v979_v33, %v3435_v43  ;;  %v1060_v38 = vadd.f32 %v1059_v36, %v3435_v43  ;;  %v981_v39 = vpop.f32.mrb[10].mxu0  ;;  %v1061_v15 = vpop.f32.mrb[10].mxu1 }
 0x193   : > { %v982_v45 = vadd.f32 %v981_v39, %v3433_v35  ;;  %v1062_v19 = vadd.f32 %v1061_v15, %v3433_v35  ;;  %v983_v46 = vpop.f32.mrb[11].mxu0  ;;  %v1063_v56 = vpop.f32.mrb[11].mxu1 }
 0x194   : > { %v2505_v57 = vpack.c.bf16 %v980_v37, %v978_v29  ;;  %v2553_v1 = vpack.c.bf16 %v1060_v38, %v1058_v30  ;;  %v984_v24 = vadd.f32 %v983_v46, %v3435_v43  ;;  %v1064_v34 = vadd.f32 %v1063_v56, %v3435_v43 }
 0x196   : > { %2090 = vst [vmem:[%s3446_s20 + $0x60] sm:$0xff] %v2505_v57  ;;  %2138 = vst [vmem:[%s3446_s20 + $0x1e0] sm:$0xff] %v2553_v1  ;;  %v2508_v44 = vpack.c.bf16 %v984_v24, %v982_v45  ;;  %v2556_v54 = vpack.c.bf16 %v1064_v34, %v1062_v19 }
 0x198   : > { %2093 = vst [vmem:[%s3446_s20 + $0x78] sm:$0xff] %v2508_v44  ;;  %2141 = vst [vmem:[%s3446_s20 + $0x1f8] sm:$0xff] %v2556_v54  ;;  %v987_v55 = vpop.f32.mrb[12].mxu0  ;;  %v1067_v5 = vpop.f32.mrb[12].mxu1 }
 0x199   : > { %v988_v6 = vadd.f32 %v987_v55, %v3433_v35  ;;  %v1068_v17 = vadd.f32 %v1067_v5, %v3433_v35  ;;  %v989_v18 = vpop.f32.mrb[13].mxu0  ;;  %v1069_v31 = vpop.f32.mrb[13].mxu1 }
 0x19a   : > { %v990_v32 = vadd.f32 %v989_v18, %v3435_v43  ;;  %v1070_v40 = vadd.f32 %v1069_v31, %v3435_v43  ;;  %v991_v41 = vpop.f32.mrb[14].mxu0  ;;  %v1071_v42 = vpop.f32.mrb[14].mxu1 }
 0x19b   : > { %v992_v47 = vadd.f32 %v991_v41, %v3433_v35  ;;  %v1072_v48 = vadd.f32 %v1071_v42, %v3433_v35  ;;  %v993_v49 = vpop.f32.mrb[15].mxu0  ;;  %v1073_v50 = vpop.f32.mrb[15].mxu1 }
 0x19c   : > { %v2511_v51 = vpack.c.bf16 %v990_v32, %v988_v6  ;;  %v2559_v52 = vpack.c.bf16 %v1070_v40, %v1068_v17  ;;  %v994_v53 = vadd.f32 %v993_v49, %v3435_v43  ;;  %v1074_v58 = vadd.f32 %v1073_v50, %v3435_v43 }
 0x19e   : > { %2096 = vst [vmem:[%s3446_s20 + $0x90] sm:$0xff] %v2511_v51  ;;  %2144 = vst [vmem:[%s3446_s20 + $0x210] sm:$0xff] %v2559_v52  ;;  %v2514_v59 = vpack.c.bf16 %v994_v53, %v992_v47  ;;  %v2562_v60 = vpack.c.bf16 %v1074_v58, %v1072_v48 }
 0x1a0   : > { %2099 = vst [vmem:[%s3446_s20 + $0xa8] sm:$0xff] %v2514_v59  ;;  %2147 = vst [vmem:[%s3446_s20 + $0x228] sm:$0xff] %v2562_v60  ;;  %v997_v61 = vpop.f32.mrb[16].mxu0  ;;  %v1077_v62 = vpop.f32.mrb[16].mxu1 }
 0x1a1   : > { %v998_v63 = vadd.f32 %v997_v61, %v3433_v35  ;;  %v1078_v0 = vadd.f32 %v1077_v62, %v3433_v35  ;;  %v999_v3 = vpop.f32.mrb[17].mxu0  ;;  %v1079_v4 = vpop.f32.mrb[17].mxu1 }
 0x1a2   : > { %v1000_v7 = vadd.f32 %v999_v3, %v3435_v43  ;;  %v1080_v8 = vadd.f32 %v1079_v4, %v3435_v43  ;;  %v1001_v9 = vpop.f32.mrb[18].mxu0  ;;  %v1081_v10 = vpop.f32.mrb[18].mxu1 }
 0x1a3   : > { %v1002_v11 = vadd.f32 %v1001_v9, %v3433_v35  ;;  %v1082_v14 = vadd.f32 %v1081_v10, %v3433_v35  ;;  %v1003_v16 = vpop.f32.mrb[19].mxu0  ;;  %v1083_v20 = vpop.f32.mrb[19].mxu1 }
 0x1a4   : > { %v2517_v21 = vpack.c.bf16 %v1000_v7, %v998_v63  ;;  %v2565_v22 = vpack.c.bf16 %v1080_v8, %v1078_v0  ;;  %v1004_v25 = vadd.f32 %v1003_v16, %v3435_v43  ;;  %v1084_v26 = vadd.f32 %v1083_v20, %v3435_v43 }
 0x1a6   : > { %2102 = vst [vmem:[%s3446_s20 + $0xc0] sm:$0xff] %v2517_v21  ;;  %2150 = vst [vmem:[%s3446_s20 + $0x240] sm:$0xff] %v2565_v22  ;;  %v2520_v27 = vpack.c.bf16 %v1004_v25, %v1002_v11  ;;  %v2568_v28 = vpack.c.bf16 %v1084_v26, %v1082_v14 }
 0x1a8   : > { %2105 = vst [vmem:[%s3446_s20 + $0xd8] sm:$0xff] %v2520_v27  ;;  %2153 = vst [vmem:[%s3446_s20 + $0x258] sm:$0xff] %v2568_v28  ;;  %v1007_v29 = vpop.f32.mrb[20].mxu0  ;;  %v1087_v30 = vpop.f32.mrb[20].mxu1 }
 0x1a9   : > { %v1008_v33 = vadd.f32 %v1007_v29, %v3433_v35  ;;  %v1088_v36 = vadd.f32 %v1087_v30, %v3433_v35  ;;  %v1009_v37 = vpop.f32.mrb[21].mxu0  ;;  %v1089_v38 = vpop.f32.mrb[21].mxu1 }
 0x1aa   : > { %v1010_v39 = vadd.f32 %v1009_v37, %v3435_v43  ;;  %v1090_v15 = vadd.f32 %v1089_v38, %v3435_v43  ;;  %v1011_v45 = vpop.f32.mrb[22].mxu0  ;;  %v1091_v19 = vpop.f32.mrb[22].mxu1 }
 0x1ab   : > { %v1012_v46 = vadd.f32 %v1011_v45, %v3433_v35  ;;  %v1092_v56 = vadd.f32 %v1091_v19, %v3433_v35  ;;  %v1013_v57 = vpop.f32.mrb[23].mxu0  ;;  %v1093_v1 = vpop.f32.mrb[23].mxu1 }
 0x1ac   : > { %v2523_v24 = vpack.c.bf16 %v1010_v39, %v1008_v33  ;;  %v2571_v34 = vpack.c.bf16 %v1090_v15, %v1088_v36  ;;  %v1014_v44 = vadd.f32 %v1013_v57, %v3435_v43  ;;  %v1094_v54 = vadd.f32 %v1093_v1, %v3435_v43 }
 0x1ae   : > { %2108 = vst [vmem:[%s3446_s20 + $0xf0] sm:$0xff] %v2523_v24  ;;  %2156 = vst [vmem:[%s3446_s20 + $0x270] sm:$0xff] %v2571_v34  ;;  %v2526_v55 = vpack.c.bf16 %v1014_v44, %v1012_v46  ;;  %v2574_v5 = vpack.c.bf16 %v1094_v54, %v1092_v56 }
 0x1b0   : > { %2111 = vst [vmem:[%s3446_s20 + $0x108] sm:$0xff] %v2526_v55  ;;  %2159 = vst [vmem:[%s3446_s20 + $0x288] sm:$0xff] %v2574_v5  ;;  %v1017_v6 = vpop.f32.mrb[24].mxu0  ;;  %v1097_v17 = vpop.f32.mrb[24].mxu1 }
 0x1b1   : > { %v1018_v18 = vadd.f32 %v1017_v6, %v3433_v35  ;;  %v1098_v31 = vadd.f32 %v1097_v17, %v3433_v35  ;;  %v1019_v32 = vpop.f32.mrb[25].mxu0  ;;  %v1099_v40 = vpop.f32.mrb[25].mxu1 }
 0x1b2   : > { %v1020_v41 = vadd.f32 %v1019_v32, %v3435_v43  ;;  %v1100_v42 = vadd.f32 %v1099_v40, %v3435_v43  ;;  %v1021_v47 = vpop.f32.mrb[26].mxu0  ;;  %v1101_v48 = vpop.f32.mrb[26].mxu1 }
 0x1b3   : > { %v1022_v49 = vadd.f32 %v1021_v47, %v3433_v35  ;;  %v1102_v50 = vadd.f32 %v1101_v48, %v3433_v35  ;;  %v1023_v51 = vpop.f32.mrb[27].mxu0  ;;  %v1103_v52 = vpop.f32.mrb[27].mxu1 }
 0x1b4   : > { %v2529_v53 = vpack.c.bf16 %v1020_v41, %v1018_v18  ;;  %v2577_v58 = vpack.c.bf16 %v1100_v42, %v1098_v31  ;;  %v1024_v59 = vadd.f32 %v1023_v51, %v3435_v43  ;;  %v1104_v60 = vadd.f32 %v1103_v52, %v3435_v43 }
 0x1b6   : > { %2114 = vst [vmem:[%s3446_s20 + $0x120] sm:$0xff] %v2529_v53  ;;  %2162 = vst [vmem:[%s3446_s20 + $0x2a0] sm:$0xff] %v2577_v58  ;;  %v2532_v61 = vpack.c.bf16 %v1024_v59, %v1022_v49  ;;  %v2580_v62 = vpack.c.bf16 %v1104_v60, %v1102_v50 }
 0x1b8   : > { %2117 = vst [vmem:[%s3446_s20 + $0x138] sm:$0xff] %v2532_v61  ;;  %2165 = vst [vmem:[%s3446_s20 + $0x2b8] sm:$0xff] %v2580_v62  ;;  %v1027_v63 = vpop.f32.mrb[28].mxu0  ;;  %v1107_v0 = vpop.f32.mrb[28].mxu1 }
 0x1b9   : > { %v1028_v3 = vadd.f32 %v1027_v63, %v3433_v35  ;;  %v1108_v4 = vadd.f32 %v1107_v0, %v3433_v35  ;;  %v1029_v7 = vpop.f32.mrb[29].mxu0  ;;  %v1109_v8 = vpop.f32.mrb[29].mxu1 }
 0x1ba   : > { %v1030_v9 = vadd.f32 %v1029_v7, %v3435_v43  ;;  %v1110_v10 = vadd.f32 %v1109_v8, %v3435_v43  ;;  %v1031_v11 = vpop.f32.mrb[30].mxu0  ;;  %v1111_v14 = vpop.f32.mrb[30].mxu1 }
 0x1bb   : > { %v1032_v16 = vadd.f32 %v1031_v11, %v3433_v35  ;;  %v1112_v20 = vadd.f32 %v1111_v14, %v3433_v35  ;;  %v1033_v21 = vpop.f32.mrb[31].mxu0  ;;  %v1113_v22 = vpop.f32.mrb[31].mxu1 }
 0x1bc   : > { %v2535_v25 = vpack.c.bf16 %v1030_v9, %v1028_v3  ;;  %v2583_v26 = vpack.c.bf16 %v1110_v10, %v1108_v4  ;;  %v1034_v27 = vadd.f32 %v1033_v21, %v3435_v43  ;;  %v1114_v28 = vadd.f32 %v1113_v22, %v3435_v43 }
 0x1be   : > { %2120 = vst [vmem:[%s3446_s20 + $0x150] sm:$0xff] %v2535_v25  ;;  %2168 = vst [vmem:[%s3446_s20 + $0x2d0] sm:$0xff] %v2583_v26  ;;  %v2538_v29 = vpack.c.bf16 %v1034_v27, %v1032_v16  ;;  %v2586_v30 = vpack.c.bf16 %v1114_v28, %v1112_v20 }
 0x1c0   : > { %2123 = vst [vmem:[%s3446_s20 + $0x168] sm:$0xff] %v2538_v29  ;;  %2171 = vst [vmem:[%s3446_s20 + $0x2e8] sm:$0xff] %v2586_v30  ;;  %v1150_v33 = vpop.f32.mrb[32].mxu1  ;;  %v1343_v36 = vpop.f32.mrb[32].mxu0 }
 0x1c1   : > { %v1151_v37 = vadd.f32 %v1150_v33, %v3407_v2  ;;  %v1344_v35 = vadd.f32 %v1343_v36, %v3409_v12  ;;  %v1152_v38 = vpop.f32.mrb[33].mxu1  ;;  %v1345_v39 = vpop.f32.mrb[33].mxu0 }
 0x1c2   : > { %v1153_v15 = vadd.f32 %v1152_v38, %v3411_v13  ;;  %v1346_v43 = vadd.f32 %v1345_v39, %v3413_v23  ;;  %v1154_v45 = vpop.f32.mrb[34].mxu1  ;;  %v1347_v19 = vpop.f32.mrb[34].mxu0 }
 0x1c3   : > { %v1155_v46 = vadd.f32 %v1154_v45, %v3407_v2  ;;  %v1348_v56 = vadd.f32 %v1347_v19, %v3409_v12  ;;  %v1156_v57 = vpop.f32.mrb[35].mxu1  ;;  %v1349_v1 = vpop.f32.mrb[35].mxu0 }
 0x1c4   : > { %v2494_v24 = vpack.c.bf16 %v1153_v15, %v1151_v37  ;;  %v2495_v34 = vpack.c.bf16 %v1346_v43, %v1344_v35  ;;  %v1157_v44 = vadd.f32 %v1156_v57, %v3411_v13  ;;  %v1350_v54 = vadd.f32 %v1349_v1, %v3413_v23 }
 0x1c6   : > { %2079 = vst [vmem:[%s3446_s20 + $0x8] sm:$0xff] %v2494_v24  ;;  %2080 = vst [vmem:[%s3446_s20 + $0x10] sm:$0xff] %v2495_v34  ;;  %v2497_v55 = vpack.c.bf16 %v1157_v44, %v1155_v46  ;;  %v2498_v5 = vpack.c.bf16 %v1350_v54, %v1348_v56 }
 0x1c8   : > { %2082 = vst [vmem:[%s3446_s20 + $0x20] sm:$0xff] %v2497_v55  ;;  %2083 = vst [vmem:[%s3446_s20 + $0x28] sm:$0xff] %v2498_v5  ;;  %v1160_v6 = vpop.f32.mrb[36].mxu1  ;;  %v1353_v17 = vpop.f32.mrb[36].mxu0 }
 0x1c9   : > { %v1161_v18 = vadd.f32 %v1160_v6, %v3407_v2  ;;  %v1354_v31 = vadd.f32 %v1353_v17, %v3409_v12  ;;  %v1162_v32 = vpop.f32.mrb[37].mxu1  ;;  %v1355_v40 = vpop.f32.mrb[37].mxu0 }
 0x1ca   : > { %v1163_v41 = vadd.f32 %v1162_v32, %v3411_v13  ;;  %v1356_v42 = vadd.f32 %v1355_v40, %v3413_v23  ;;  %v1164_v47 = vpop.f32.mrb[38].mxu1  ;;  %v1357_v48 = vpop.f32.mrb[38].mxu0 }
 0x1cb   : > { %v1165_v49 = vadd.f32 %v1164_v47, %v3407_v2  ;;  %v1358_v50 = vadd.f32 %v1357_v48, %v3409_v12  ;;  %v1166_v51 = vpop.f32.mrb[39].mxu1  ;;  %v1359_v52 = vpop.f32.mrb[39].mxu0 }
 0x1cc   : > { %v2500_v53 = vpack.c.bf16 %v1163_v41, %v1161_v18  ;;  %v2501_v58 = vpack.c.bf16 %v1356_v42, %v1354_v31  ;;  %v1167_v59 = vadd.f32 %v1166_v51, %v3411_v13  ;;  %v1360_v60 = vadd.f32 %v1359_v52, %v3413_v23 }
 0x1ce   : > { %2085 = vst [vmem:[%s3446_s20 + $0x38] sm:$0xff] %v2500_v53  ;;  %2086 = vst [vmem:[%s3446_s20 + $0x40] sm:$0xff] %v2501_v58  ;;  %v2503_v61 = vpack.c.bf16 %v1167_v59, %v1165_v49  ;;  %v2504_v62 = vpack.c.bf16 %v1360_v60, %v1358_v50 }
 0x1d0   : > { %2088 = vst [vmem:[%s3446_s20 + $0x50] sm:$0xff] %v2503_v61  ;;  %2089 = vst [vmem:[%s3446_s20 + $0x58] sm:$0xff] %v2504_v62  ;;  %v1170_v63 = vpop.f32.mrb[40].mxu1  ;;  %v1363_v0 = vpop.f32.mrb[40].mxu0 }
 0x1d1   : > { %v1171_v3 = vadd.f32 %v1170_v63, %v3407_v2  ;;  %v1364_v4 = vadd.f32 %v1363_v0, %v3409_v12  ;;  %v1172_v7 = vpop.f32.mrb[41].mxu1  ;;  %v1365_v8 = vpop.f32.mrb[41].mxu0 }
 0x1d2   : > { %v1173_v9 = vadd.f32 %v1172_v7, %v3411_v13  ;;  %v1366_v10 = vadd.f32 %v1365_v8, %v3413_v23  ;;  %v1174_v11 = vpop.f32.mrb[42].mxu1  ;;  %v1367_v14 = vpop.f32.mrb[42].mxu0 }
 0x1d3   : > { %v1175_v16 = vadd.f32 %v1174_v11, %v3407_v2  ;;  %v1368_v20 = vadd.f32 %v1367_v14, %v3409_v12  ;;  %v1176_v21 = vpop.f32.mrb[43].mxu1  ;;  %v1369_v22 = vpop.f32.mrb[43].mxu0 }
 0x1d4   : > { %v2506_v25 = vpack.c.bf16 %v1173_v9, %v1171_v3  ;;  %v2507_v26 = vpack.c.bf16 %v1366_v10, %v1364_v4  ;;  %v1177_v27 = vadd.f32 %v1176_v21, %v3411_v13  ;;  %v1370_v28 = vadd.f32 %v1369_v22, %v3413_v23 }
 0x1d6   : > { %2091 = vst [vmem:[%s3446_s20 + $0x68] sm:$0xff] %v2506_v25  ;;  %2092 = vst [vmem:[%s3446_s20 + $0x70] sm:$0xff] %v2507_v26  ;;  %v2509_v29 = vpack.c.bf16 %v1177_v27, %v1175_v16  ;;  %v2510_v30 = vpack.c.bf16 %v1370_v28, %v1368_v20 }
 0x1d8   : > { %2094 = vst [vmem:[%s3446_s20 + $0x80] sm:$0xff] %v2509_v29  ;;  %2095 = vst [vmem:[%s3446_s20 + $0x88] sm:$0xff] %v2510_v30  ;;  %v1180_v33 = vpop.f32.mrb[44].mxu1  ;;  %v1373_v36 = vpop.f32.mrb[44].mxu0 }
 0x1d9   : > { %v1181_v37 = vadd.f32 %v1180_v33, %v3407_v2  ;;  %v1374_v35 = vadd.f32 %v1373_v36, %v3409_v12  ;;  %v1182_v38 = vpop.f32.mrb[45].mxu1  ;;  %v1375_v39 = vpop.f32.mrb[45].mxu0 }
 0x1da   : > { %v1183_v15 = vadd.f32 %v1182_v38, %v3411_v13  ;;  %v1376_v43 = vadd.f32 %v1375_v39, %v3413_v23  ;;  %v1184_v45 = vpop.f32.mrb[46].mxu1  ;;  %v1377_v19 = vpop.f32.mrb[46].mxu0 }
 0x1db   : > { %v1185_v46 = vadd.f32 %v1184_v45, %v3407_v2  ;;  %v1378_v56 = vadd.f32 %v1377_v19, %v3409_v12  ;;  %v1186_v57 = vpop.f32.mrb[47].mxu1  ;;  %v1379_v1 = vpop.f32.mrb[47].mxu0 }
 0x1dc   : > { %v2512_v24 = vpack.c.bf16 %v1183_v15, %v1181_v37  ;;  %v2513_v34 = vpack.c.bf16 %v1376_v43, %v1374_v35  ;;  %v1187_v44 = vadd.f32 %v1186_v57, %v3411_v13  ;;  %v1380_v54 = vadd.f32 %v1379_v1, %v3413_v23 }
 0x1de   : > { %2097 = vst [vmem:[%s3446_s20 + $0x98] sm:$0xff] %v2512_v24  ;;  %2098 = vst [vmem:[%s3446_s20 + $0xa0] sm:$0xff] %v2513_v34  ;;  %v2515_v55 = vpack.c.bf16 %v1187_v44, %v1185_v46  ;;  %v2516_v5 = vpack.c.bf16 %v1380_v54, %v1378_v56 }
 0x1e0   : > { %2100 = vst [vmem:[%s3446_s20 + $0xb0] sm:$0xff] %v2515_v55  ;;  %2101 = vst [vmem:[%s3446_s20 + $0xb8] sm:$0xff] %v2516_v5  ;;  %v1190_v6 = vpop.f32.mrb[48].mxu1  ;;  %v1383_v17 = vpop.f32.mrb[48].mxu0 }
 0x1e1   : > { %v1191_v18 = vadd.f32 %v1190_v6, %v3407_v2  ;;  %v1384_v31 = vadd.f32 %v1383_v17, %v3409_v12  ;;  %v1192_v32 = vpop.f32.mrb[49].mxu1  ;;  %v1385_v40 = vpop.f32.mrb[49].mxu0 }
 0x1e2   : > { %v1193_v41 = vadd.f32 %v1192_v32, %v3411_v13  ;;  %v1386_v42 = vadd.f32 %v1385_v40, %v3413_v23  ;;  %v1194_v47 = vpop.f32.mrb[50].mxu1  ;;  %v1387_v48 = vpop.f32.mrb[50].mxu0 }
 0x1e3   : > { %v1195_v49 = vadd.f32 %v1194_v47, %v3407_v2  ;;  %v1388_v50 = vadd.f32 %v1387_v48, %v3409_v12  ;;  %v1196_v51 = vpop.f32.mrb[51].mxu1  ;;  %v1389_v52 = vpop.f32.mrb[51].mxu0 }
 0x1e4   : > { %v2518_v53 = vpack.c.bf16 %v1193_v41, %v1191_v18  ;;  %v2519_v58 = vpack.c.bf16 %v1386_v42, %v1384_v31  ;;  %v1197_v59 = vadd.f32 %v1196_v51, %v3411_v13  ;;  %v1390_v60 = vadd.f32 %v1389_v52, %v3413_v23 }
 0x1e6   : > { %2103 = vst [vmem:[%s3446_s20 + $0xc8] sm:$0xff] %v2518_v53  ;;  %2104 = vst [vmem:[%s3446_s20 + $0xd0] sm:$0xff] %v2519_v58  ;;  %v2521_v61 = vpack.c.bf16 %v1197_v59, %v1195_v49  ;;  %v2522_v62 = vpack.c.bf16 %v1390_v60, %v1388_v50 }
 0x1e8   : > { %2106 = vst [vmem:[%s3446_s20 + $0xe0] sm:$0xff] %v2521_v61  ;;  %2107 = vst [vmem:[%s3446_s20 + $0xe8] sm:$0xff] %v2522_v62  ;;  %v1200_v63 = vpop.f32.mrb[52].mxu1  ;;  %v1393_v0 = vpop.f32.mrb[52].mxu0 }
 0x1e9   : > { %v1201_v3 = vadd.f32 %v1200_v63, %v3407_v2  ;;  %v1394_v4 = vadd.f32 %v1393_v0, %v3409_v12  ;;  %v1202_v7 = vpop.f32.mrb[53].mxu1  ;;  %v1395_v8 = vpop.f32.mrb[53].mxu0 }
 0x1ea   : > { %v1203_v9 = vadd.f32 %v1202_v7, %v3411_v13  ;;  %v1396_v10 = vadd.f32 %v1395_v8, %v3413_v23  ;;  %v1204_v11 = vpop.f32.mrb[54].mxu1  ;;  %v1397_v14 = vpop.f32.mrb[54].mxu0 }
 0x1eb   : > { %v1205_v16 = vadd.f32 %v1204_v11, %v3407_v2  ;;  %v1398_v20 = vadd.f32 %v1397_v14, %v3409_v12  ;;  %v1206_v21 = vpop.f32.mrb[55].mxu1  ;;  %v1399_v22 = vpop.f32.mrb[55].mxu0 }
 0x1ec   : > { %v2524_v25 = vpack.c.bf16 %v1203_v9, %v1201_v3  ;;  %v2525_v26 = vpack.c.bf16 %v1396_v10, %v1394_v4  ;;  %v1207_v27 = vadd.f32 %v1206_v21, %v3411_v13  ;;  %v1400_v28 = vadd.f32 %v1399_v22, %v3413_v23 }
 0x1ee   : > { %2109 = vst [vmem:[%s3446_s20 + $0xf8] sm:$0xff] %v2524_v25  ;;  %2110 = vst [vmem:[%s3446_s20 + $0x100] sm:$0xff] %v2525_v26  ;;  %v2527_v29 = vpack.c.bf16 %v1207_v27, %v1205_v16  ;;  %v2528_v30 = vpack.c.bf16 %v1400_v28, %v1398_v20 }
 0x1f0   : > { %2112 = vst [vmem:[%s3446_s20 + $0x110] sm:$0xff] %v2527_v29  ;;  %2113 = vst [vmem:[%s3446_s20 + $0x118] sm:$0xff] %v2528_v30  ;;  %v1210_v33 = vpop.f32.mrb[56].mxu1  ;;  %v1403_v36 = vpop.f32.mrb[56].mxu0 }
 0x1f1   : > { %v1211_v37 = vadd.f32 %v1210_v33, %v3407_v2  ;;  %v1404_v35 = vadd.f32 %v1403_v36, %v3409_v12  ;;  %v1212_v38 = vpop.f32.mrb[57].mxu1  ;;  %v1405_v39 = vpop.f32.mrb[57].mxu0 }
 0x1f2   : > { %v1213_v15 = vadd.f32 %v1212_v38, %v3411_v13  ;;  %v1406_v43 = vadd.f32 %v1405_v39, %v3413_v23  ;;  %v1214_v45 = vpop.f32.mrb[58].mxu1  ;;  %v1407_v19 = vpop.f32.mrb[58].mxu0 }
 0x1f3   : > { %v1215_v46 = vadd.f32 %v1214_v45, %v3407_v2  ;;  %v1408_v56 = vadd.f32 %v1407_v19, %v3409_v12  ;;  %v1216_v57 = vpop.f32.mrb[59].mxu1  ;;  %v1409_v1 = vpop.f32.mrb[59].mxu0 }
 0x1f4   : > { %v2530_v24 = vpack.c.bf16 %v1213_v15, %v1211_v37  ;;  %v2531_v34 = vpack.c.bf16 %v1406_v43, %v1404_v35  ;;  %v1217_v44 = vadd.f32 %v1216_v57, %v3411_v13  ;;  %v1410_v54 = vadd.f32 %v1409_v1, %v3413_v23 }
 0x1f6   : > { %2115 = vst [vmem:[%s3446_s20 + $0x128] sm:$0xff] %v2530_v24  ;;  %2116 = vst [vmem:[%s3446_s20 + $0x130] sm:$0xff] %v2531_v34  ;;  %v2533_v55 = vpack.c.bf16 %v1217_v44, %v1215_v46  ;;  %v2534_v5 = vpack.c.bf16 %v1410_v54, %v1408_v56 }
 0x1f8   : > { %2118 = vst [vmem:[%s3446_s20 + $0x140] sm:$0xff] %v2533_v55  ;;  %2119 = vst [vmem:[%s3446_s20 + $0x148] sm:$0xff] %v2534_v5  ;;  %v1220_v6 = vpop.f32.mrb[60].mxu1  ;;  %v1413_v17 = vpop.f32.mrb[60].mxu0 }
 0x1f9   : > { %v1221_v18 = vadd.f32 %v1220_v6, %v3407_v2  ;;  %v1414_v31 = vadd.f32 %v1413_v17, %v3409_v12  ;;  %v1222_v32 = vpop.f32.mrb[61].mxu1  ;;  %v1415_v40 = vpop.f32.mrb[61].mxu0 }
 0x1fa   : > { %v1223_v41 = vadd.f32 %v1222_v32, %v3411_v13  ;;  %v1416_v42 = vadd.f32 %v1415_v40, %v3413_v23  ;;  %v1224_v47 = vpop.f32.mrb[62].mxu1  ;;  %v1417_v48 = vpop.f32.mrb[62].mxu0 }
 0x1fb   : > { %v1225_v49 = vadd.f32 %v1224_v47, %v3407_v2  ;;  %v1418_v50 = vadd.f32 %v1417_v48, %v3409_v12  ;;  %v1226_v51 = vpop.f32.mrb[63].mxu1  ;;  %v1419_v52 = vpop.f32.mrb[63].mxu0 }
 0x1fc   : > { %v2536_v53 = vpack.c.bf16 %v1223_v41, %v1221_v18  ;;  %v2537_v58 = vpack.c.bf16 %v1416_v42, %v1414_v31  ;;  %v1227_v59 = vadd.f32 %v1226_v51, %v3411_v13  ;;  %v1420_v60 = vadd.f32 %v1419_v52, %v3413_v23 }
 0x1fe   : > { %2121 = vst [vmem:[%s3446_s20 + $0x158] sm:$0xff] %v2536_v53  ;;  %2122 = vst [vmem:[%s3446_s20 + $0x160] sm:$0xff] %v2537_v58  ;;  %v2539_v61 = vpack.c.bf16 %v1227_v59, %v1225_v49  ;;  %v2540_v62 = vpack.c.bf16 %v1420_v60, %v1418_v50 }
 0x200   : > { %2124 = vst [vmem:[%s3446_s20 + $0x170] sm:$0xff] %v2539_v61  ;;  %2125 = vst [vmem:[%s3446_s20 + $0x178] sm:$0xff] %v2540_v62  ;;  %v1230_v63 = vpop.f32.mrb[64].mxu1  ;;  %v1423_v0 = vpop.f32.mrb[64].mxu0 }
 0x201   : > { %v1231_v3 = vadd.f32 %v1230_v63, %v3407_v2  ;;  %v1424_v4 = vadd.f32 %v1423_v0, %v3409_v12  ;;  %v1232_v7 = vpop.f32.mrb[65].mxu1  ;;  %v1425_v8 = vpop.f32.mrb[65].mxu0 }
 0x202   : > { %v1233_v9 = vadd.f32 %v1232_v7, %v3411_v13  ;;  %v1426_v10 = vadd.f32 %v1425_v8, %v3413_v23  ;;  %v1234_v11 = vpop.f32.mrb[66].mxu1  ;;  %v1427_v14 = vpop.f32.mrb[66].mxu0 }
 0x203   : > { %v1235_v16 = vadd.f32 %v1234_v11, %v3407_v2  ;;  %v1428_v20 = vadd.f32 %v1427_v14, %v3409_v12  ;;  %v1236_v21 = vpop.f32.mrb[67].mxu1  ;;  %v1429_v22 = vpop.f32.mrb[67].mxu0 }
 0x204   : > { %v2542_v25 = vpack.c.bf16 %v1233_v9, %v1231_v3  ;;  %v2543_v26 = vpack.c.bf16 %v1426_v10, %v1424_v4  ;;  %v1237_v27 = vadd.f32 %v1236_v21, %v3411_v13  ;;  %v1430_v28 = vadd.f32 %v1429_v22, %v3413_v23 }
 0x206   : > { %2127 = vst [vmem:[%s3446_s20 + $0x188] sm:$0xff] %v2542_v25  ;;  %2128 = vst [vmem:[%s3446_s20 + $0x190] sm:$0xff] %v2543_v26  ;;  %v2545_v29 = vpack.c.bf16 %v1237_v27, %v1235_v16  ;;  %v2546_v30 = vpack.c.bf16 %v1430_v28, %v1428_v20 }
 0x208   : > { %2130 = vst [vmem:[%s3446_s20 + $0x1a0] sm:$0xff] %v2545_v29  ;;  %2131 = vst [vmem:[%s3446_s20 + $0x1a8] sm:$0xff] %v2546_v30  ;;  %v1240_v33 = vpop.f32.mrb[68].mxu1  ;;  %v1433_v36 = vpop.f32.mrb[68].mxu0 }
 0x209   : > { %v1241_v37 = vadd.f32 %v1240_v33, %v3407_v2  ;;  %v1434_v35 = vadd.f32 %v1433_v36, %v3409_v12  ;;  %v1242_v38 = vpop.f32.mrb[69].mxu1  ;;  %v1435_v39 = vpop.f32.mrb[69].mxu0 }
 0x20a   : > { %v1243_v15 = vadd.f32 %v1242_v38, %v3411_v13  ;;  %v1436_v43 = vadd.f32 %v1435_v39, %v3413_v23  ;;  %v1244_v45 = vpop.f32.mrb[70].mxu1  ;;  %v1437_v19 = vpop.f32.mrb[70].mxu0 }
 0x20b   : > { %v1245_v46 = vadd.f32 %v1244_v45, %v3407_v2  ;;  %v1438_v56 = vadd.f32 %v1437_v19, %v3409_v12  ;;  %v1246_v57 = vpop.f32.mrb[71].mxu1  ;;  %v1439_v1 = vpop.f32.mrb[71].mxu0 }
 0x20c   : > { %v2548_v24 = vpack.c.bf16 %v1243_v15, %v1241_v37  ;;  %v2549_v34 = vpack.c.bf16 %v1436_v43, %v1434_v35  ;;  %v1247_v44 = vadd.f32 %v1246_v57, %v3411_v13  ;;  %v1440_v54 = vadd.f32 %v1439_v1, %v3413_v23 }
 0x20e   : > { %2133 = vst [vmem:[%s3446_s20 + $0x1b8] sm:$0xff] %v2548_v24  ;;  %2134 = vst [vmem:[%s3446_s20 + $0x1c0] sm:$0xff] %v2549_v34  ;;  %v2551_v55 = vpack.c.bf16 %v1247_v44, %v1245_v46  ;;  %v2552_v5 = vpack.c.bf16 %v1440_v54, %v1438_v56 }
 0x210   : > { %2136 = vst [vmem:[%s3446_s20 + $0x1d0] sm:$0xff] %v2551_v55  ;;  %2137 = vst [vmem:[%s3446_s20 + $0x1d8] sm:$0xff] %v2552_v5  ;;  %v1250_v6 = vpop.f32.mrb[72].mxu1  ;;  %v1443_v17 = vpop.f32.mrb[72].mxu0 }
 0x211   : > { %v1251_v18 = vadd.f32 %v1250_v6, %v3407_v2  ;;  %v1444_v31 = vadd.f32 %v1443_v17, %v3409_v12  ;;  %v1252_v32 = vpop.f32.mrb[73].mxu1  ;;  %v1445_v40 = vpop.f32.mrb[73].mxu0 }
 0x212   : > { %v1253_v41 = vadd.f32 %v1252_v32, %v3411_v13  ;;  %v1446_v42 = vadd.f32 %v1445_v40, %v3413_v23  ;;  %v1254_v47 = vpop.f32.mrb[74].mxu1  ;;  %v1447_v48 = vpop.f32.mrb[74].mxu0 }
 0x213   : > { %v1255_v49 = vadd.f32 %v1254_v47, %v3407_v2  ;;  %v1448_v50 = vadd.f32 %v1447_v48, %v3409_v12  ;;  %v1256_v51 = vpop.f32.mrb[75].mxu1  ;;  %v1449_v52 = vpop.f32.mrb[75].mxu0 }
 0x214   : > { %v2554_v53 = vpack.c.bf16 %v1253_v41, %v1251_v18  ;;  %v2555_v58 = vpack.c.bf16 %v1446_v42, %v1444_v31  ;;  %v1257_v59 = vadd.f32 %v1256_v51, %v3411_v13  ;;  %v1450_v60 = vadd.f32 %v1449_v52, %v3413_v23 }
 0x216   : > { %2139 = vst [vmem:[%s3446_s20 + $0x1e8] sm:$0xff] %v2554_v53  ;;  %2140 = vst [vmem:[%s3446_s20 + $0x1f0] sm:$0xff] %v2555_v58  ;;  %v2557_v61 = vpack.c.bf16 %v1257_v59, %v1255_v49  ;;  %v2558_v62 = vpack.c.bf16 %v1450_v60, %v1448_v50 }
 0x218   : > { %2142 = vst [vmem:[%s3446_s20 + $0x200] sm:$0xff] %v2557_v61  ;;  %2143 = vst [vmem:[%s3446_s20 + $0x208] sm:$0xff] %v2558_v62  ;;  %v1260_v63 = vpop.f32.mrb[76].mxu1  ;;  %v1453_v0 = vpop.f32.mrb[76].mxu0 }
 0x219   : > { %v1261_v3 = vadd.f32 %v1260_v63, %v3407_v2  ;;  %v1454_v4 = vadd.f32 %v1453_v0, %v3409_v12  ;;  %v1262_v7 = vpop.f32.mrb[77].mxu1  ;;  %v1455_v8 = vpop.f32.mrb[77].mxu0 }
 0x21a   : > { %v1263_v9 = vadd.f32 %v1262_v7, %v3411_v13  ;;  %v1456_v10 = vadd.f32 %v1455_v8, %v3413_v23  ;;  %v1264_v11 = vpop.f32.mrb[78].mxu1  ;;  %v1457_v14 = vpop.f32.mrb[78].mxu0 }
 0x21b   : > { %v1265_v16 = vadd.f32 %v1264_v11, %v3407_v2  ;;  %v1458_v20 = vadd.f32 %v1457_v14, %v3409_v12  ;;  %v1266_v21 = vpop.f32.mrb[79].mxu1  ;;  %v1459_v22 = vpop.f32.mrb[79].mxu0 }
 0x21c   : > { %v2560_v25 = vpack.c.bf16 %v1263_v9, %v1261_v3  ;;  %v2561_v26 = vpack.c.bf16 %v1456_v10, %v1454_v4  ;;  %v1267_v27 = vadd.f32 %v1266_v21, %v3411_v13  ;;  %v1460_v28 = vadd.f32 %v1459_v22, %v3413_v23 }
 0x21e   : > { %2145 = vst [vmem:[%s3446_s20 + $0x218] sm:$0xff] %v2560_v25  ;;  %2146 = vst [vmem:[%s3446_s20 + $0x220] sm:$0xff] %v2561_v26  ;;  %v2563_v29 = vpack.c.bf16 %v1267_v27, %v1265_v16  ;;  %v2564_v30 = vpack.c.bf16 %v1460_v28, %v1458_v20 }
 0x220   : > { %2148 = vst [vmem:[%s3446_s20 + $0x230] sm:$0xff] %v2563_v29  ;;  %2149 = vst [vmem:[%s3446_s20 + $0x238] sm:$0xff] %v2564_v30  ;;  %v1270_v33 = vpop.f32.mrb[80].mxu1  ;;  %v1463_v36 = vpop.f32.mrb[80].mxu0 }
 0x221   : > { %v1271_v37 = vadd.f32 %v1270_v33, %v3407_v2  ;;  %v1464_v35 = vadd.f32 %v1463_v36, %v3409_v12  ;;  %v1272_v38 = vpop.f32.mrb[81].mxu1  ;;  %v1465_v39 = vpop.f32.mrb[81].mxu0 }
 0x222   : > { %v1273_v15 = vadd.f32 %v1272_v38, %v3411_v13  ;;  %v1466_v43 = vadd.f32 %v1465_v39, %v3413_v23  ;;  %v1274_v45 = vpop.f32.mrb[82].mxu1  ;;  %v1467_v19 = vpop.f32.mrb[82].mxu0 }
 0x223   : > { %v1275_v46 = vadd.f32 %v1274_v45, %v3407_v2  ;;  %v1468_v56 = vadd.f32 %v1467_v19, %v3409_v12  ;;  %v1276_v57 = vpop.f32.mrb[83].mxu1  ;;  %v1469_v1 = vpop.f32.mrb[83].mxu0 }
 0x224   : > { %v2566_v24 = vpack.c.bf16 %v1273_v15, %v1271_v37  ;;  %v2567_v34 = vpack.c.bf16 %v1466_v43, %v1464_v35  ;;  %v1277_v44 = vadd.f32 %v1276_v57, %v3411_v13  ;;  %v1470_v54 = vadd.f32 %v1469_v1, %v3413_v23 }
 0x226   : > { %2151 = vst [vmem:[%s3446_s20 + $0x248] sm:$0xff] %v2566_v24  ;;  %2152 = vst [vmem:[%s3446_s20 + $0x250] sm:$0xff] %v2567_v34  ;;  %v2569_v55 = vpack.c.bf16 %v1277_v44, %v1275_v46  ;;  %v2570_v5 = vpack.c.bf16 %v1470_v54, %v1468_v56 }
 0x228   : > { %2154 = vst [vmem:[%s3446_s20 + $0x260] sm:$0xff] %v2569_v55  ;;  %2155 = vst [vmem:[%s3446_s20 + $0x268] sm:$0xff] %v2570_v5  ;;  %v1280_v6 = vpop.f32.mrb[84].mxu1  ;;  %v1473_v17 = vpop.f32.mrb[84].mxu0 }
 0x229   : > { %v1281_v18 = vadd.f32 %v1280_v6, %v3407_v2  ;;  %v1474_v31 = vadd.f32 %v1473_v17, %v3409_v12  ;;  %v1282_v32 = vpop.f32.mrb[85].mxu1  ;;  %v1475_v40 = vpop.f32.mrb[85].mxu0 }
 0x22a   : > { %v1283_v41 = vadd.f32 %v1282_v32, %v3411_v13  ;;  %v1476_v42 = vadd.f32 %v1475_v40, %v3413_v23  ;;  %v1284_v47 = vpop.f32.mrb[86].mxu1  ;;  %v1477_v48 = vpop.f32.mrb[86].mxu0 }
 0x22b   : > { %v1285_v49 = vadd.f32 %v1284_v47, %v3407_v2  ;;  %v1478_v50 = vadd.f32 %v1477_v48, %v3409_v12  ;;  %v1286_v51 = vpop.f32.mrb[87].mxu1  ;;  %v1479_v52 = vpop.f32.mrb[87].mxu0 }
 0x22c   : > { %v2572_v53 = vpack.c.bf16 %v1283_v41, %v1281_v18  ;;  %v2573_v58 = vpack.c.bf16 %v1476_v42, %v1474_v31  ;;  %v1287_v59 = vadd.f32 %v1286_v51, %v3411_v13  ;;  %v1480_v60 = vadd.f32 %v1479_v52, %v3413_v23 }
 0x22e   : > { %2157 = vst [vmem:[%s3446_s20 + $0x278] sm:$0xff] %v2572_v53  ;;  %2158 = vst [vmem:[%s3446_s20 + $0x280] sm:$0xff] %v2573_v58  ;;  %v2575_v61 = vpack.c.bf16 %v1287_v59, %v1285_v49  ;;  %v2576_v62 = vpack.c.bf16 %v1480_v60, %v1478_v50 }
 0x230   : > { %2160 = vst [vmem:[%s3446_s20 + $0x290] sm:$0xff] %v2575_v61  ;;  %2161 = vst [vmem:[%s3446_s20 + $0x298] sm:$0xff] %v2576_v62  ;;  %v1290_v63 = vpop.f32.mrb[88].mxu1  ;;  %v1483_v0 = vpop.f32.mrb[88].mxu0 }
 0x231   : > { %v1291_v3 = vadd.f32 %v1290_v63, %v3407_v2  ;;  %v1484_v4 = vadd.f32 %v1483_v0, %v3409_v12  ;;  %v1292_v7 = vpop.f32.mrb[89].mxu1  ;;  %v1485_v8 = vpop.f32.mrb[89].mxu0 }
 0x232   : > { %v1293_v9 = vadd.f32 %v1292_v7, %v3411_v13  ;;  %v1486_v10 = vadd.f32 %v1485_v8, %v3413_v23  ;;  %v1294_v11 = vpop.f32.mrb[90].mxu1  ;;  %v1487_v14 = vpop.f32.mrb[90].mxu0 }
 0x233   : > { %v1295_v16 = vadd.f32 %v1294_v11, %v3407_v2  ;;  %v1488_v20 = vadd.f32 %v1487_v14, %v3409_v12  ;;  %v1296_v21 = vpop.f32.mrb[91].mxu1  ;;  %v1489_v22 = vpop.f32.mrb[91].mxu0 }
 0x234   : > { %v2578_v25 = vpack.c.bf16 %v1293_v9, %v1291_v3  ;;  %v2579_v26 = vpack.c.bf16 %v1486_v10, %v1484_v4  ;;  %v1297_v27 = vadd.f32 %v1296_v21, %v3411_v13  ;;  %v1490_v28 = vadd.f32 %v1489_v22, %v3413_v23 }
 0x236   : > { %2163 = vst [vmem:[%s3446_s20 + $0x2a8] sm:$0xff] %v2578_v25  ;;  %2164 = vst [vmem:[%s3446_s20 + $0x2b0] sm:$0xff] %v2579_v26  ;;  %v2581_v29 = vpack.c.bf16 %v1297_v27, %v1295_v16  ;;  %v2582_v30 = vpack.c.bf16 %v1490_v28, %v1488_v20 }
 0x238   : > { %2166 = vst [vmem:[%s3446_s20 + $0x2c0] sm:$0xff] %v2581_v29  ;;  %2167 = vst [vmem:[%s3446_s20 + $0x2c8] sm:$0xff] %v2582_v30  ;;  %v1300_v33 = vpop.f32.mrb[92].mxu1  ;;  %v1493_v36 = vpop.f32.mrb[92].mxu0 }
 0x239   : > { %v1301_v37 = vadd.f32 %v1300_v33, %v3407_v2  ;;  %v1494_v35 = vadd.f32 %v1493_v36, %v3409_v12  ;;  %v1302_v38 = vpop.f32.mrb[93].mxu1  ;;  %v1495_v39 = vpop.f32.mrb[93].mxu0 }
 0x23a   : > { %v1303_v15 = vadd.f32 %v1302_v38, %v3411_v13  ;;  %v1496_v43 = vadd.f32 %v1495_v39, %v3413_v23  ;;  %v1304_v45 = vpop.f32.mrb[94].mxu1  ;;  %v1497_v19 = vpop.f32.mrb[94].mxu0 }
 0x23b   : > { %v1305_v46 = vadd.f32 %v1304_v45, %v3407_v2  ;;  %v1498_v56 = vadd.f32 %v1497_v19, %v3409_v12  ;;  %v1306_v57 = vpop.f32.mrb[95].mxu1  ;;  %v1499_v1 = vpop.f32.mrb[95].mxu0 }
 0x23c   : > { %v2584_v24 = vpack.c.bf16 %v1303_v15, %v1301_v37  ;;  %v2585_v34 = vpack.c.bf16 %v1496_v43, %v1494_v35  ;;  %v1307_v44 = vadd.f32 %v1306_v57, %v3411_v13  ;;  %v1500_v54 = vadd.f32 %v1499_v1, %v3413_v23 }
 0x23e   : > { %2169 = vst [vmem:[%s3446_s20 + $0x2d8] sm:$0xff] %v2584_v24  ;;  %2170 = vst [vmem:[%s3446_s20 + $0x2e0] sm:$0xff] %v2585_v34  ;;  %v2587_v2 = vpack.c.bf16 %v1307_v44, %v1305_v46  ;;  %v2588_v12 = vpack.c.bf16 %v1500_v54, %v1498_v56 }
 0x240   : > { %2172 = vst [vmem:[%s3446_s20 + $0x2f0] sm:$0xff] %v2587_v2  ;;  %2173 = vst [vmem:[%s3446_s20 + $0x2f8] sm:$0xff] %v2588_v12 }
 0x241   : > { %2939 = shalt.err (!%p2936_p7)
}
 0x242   : > { %s2940_s10 = scalar_lea.hbm %s3729_s27, 12288  ;;  %s2944_s22 = scalar_lea.hbm %s3781_s3, 49152 }
 0x243   : > { %p2941_p9 = scmp.ne.s32.totalorder %s3729_s27, %s2940_s10  ;;  %p2945_p5 = scmp.lt.u32.totalorder %s3729_s27, %s3781_s3 }
 0x244   : > { %p2946_p10 = scmp.lt.u32.totalorder %s2944_s22, %s2940_s10  ;;  %p2948_p1 = scmp.lt.u32.totalorder %s2940_s10, %s3729_s27 }
 0x245   : > { %p2942_p12 = pnand %p2941_p9, %p3140_p4 }
 0x246   : > { %p2947_p11 = por %p2946_p10, %p2945_p5 }
 0x247   : > { %p2943_p0 = pneg %p2942_p12 }
 0x248   : > { %p2949_p2 = por %p2948_p1, %p2947_p11 }
 0x24a   : > { %p2950_p6 = pnand %p2949_p2, %p2943_p0 }
 0x24c   : > { %2953 = shalt.err (!%p2950_p6)
}
 0x24d   : > { %s3006_s18 = smov 384   ;;  %s3007_s20 = smov 24  }
 0x24e   : > { %2633 = dma.vmem_to_hbm [thread:$0]  (%p3140_p4), %s3731_s24, 12288, %s3729_s27, %s2175_s23, %s3006_s18, %s3006_s18, %s3007_s20  }
 0x24f PF: > { %p2655_p8 = scmp.ge.s32.totalorder %s2996_s15, 2  ;;  %s2204_s17 = sand.u32 1, %s2984_s12  }
 0x250   : > { %p3796_p13 = scmp.ne.s32.totalorder %s3786_s19, 0  ;;  %s2205_s16 = scalar_lea.sflag [#allocation4], %s2204_s17 }
 0x252   : > { %p2647_p3 = pnand %p2655_p8, %p3796_p13 }
 0x254   : > { %2979 = dma.done.wait (!%p2647_p3), %s2205_s16, 12288  }
 0x255   : > { %2981 = vsyncadd (!%p2647_p3), %s2205_s16, 4294955008  ;;  %p17_p7 = scmp.ge.s32.totalorder %s3130_s4, 6   ;;  %s3797_s12 = smov %s2988_s13 }
 0x256   : > { %s3798_s13 = smov %s2992_s14  ;;  %s3799_s14 = smov %s3146_s7 }
 0x257   : > { %s3800_s15 = smov %s3130_s4  ;;  %19 = sbr.rel (!%p17_p7) target bundleno = 6 (0x6), region = 85 }
 0x25e   :  { %2210 = vsyncpa [#allocation3], 1 }
 0x25f   :  { %2212 = vsyncpa [#allocation3 + $0x1], 1 }
 0x260   :  { %2213 = vsyncpa [#allocation6], 1 }
 0x261   :  { %2214 = vsyncpa [#allocation4], 1 }
 0x262   :  { %2216 = vsyncpa [#allocation4 + $0x1], 1 }

</bundles_post_ra>
